<compile_context>
chip_gen: v7x
topology: tpu7x:2x2x1
jax: 0.10.0
libtpu: 0.0.40
codegen_flags: <defaults>
</compile_context>

<pallas_src>
import math
import functools

import jax
import jax.numpy as jnp
from jax.experimental import pallas as pl
from jax.experimental.pallas import tpu as pltpu


def _mha_kernel(key_ref, value_ref, query_ref,
                wk_ref, bk_ref, wv_ref, bv_ref, wq_ref, bq_ref, wf_ref, bf_ref,
                out_ref, top_attn_ref, kup_ref, vup_ref,
                kh_sc, vh_sc,
                *, head_count, dim_per_head):
    H, Dh = head_count, dim_per_head
    scale = 1.0 / math.sqrt(Dh)

    def split_heads(x):
        # [S, H*Dh] -> [H, S, Dh]. Pure data movement: lane slices stacked on a
        # new leading (non-lane) axis, so the batched einsums below see the
        # head dim as a batch dim.
        return jnp.stack([x[:, h * Dh:(h + 1) * Dh] for h in range(H)], axis=0)

    # ---- K/V projections: once per batch element (first Q tile). Results are
    # written to the [B, H, K, Dh] cache outputs (f32) and kept resident in
    # bf16 VMEM scratch for all subsequent Q tiles of this batch element. ----
    @pl.when(pl.program_id(1) == 0)
    def _():
        k_in = key_ref[0].astype(jnp.bfloat16)       # [K, D]
        v_in = value_ref[0].astype(jnp.bfloat16)     # [K, D]
        key_up = jnp.dot(k_in, wk_ref[...],
                         preferred_element_type=jnp.float32) + bk_ref[...]   # [K, H*Dh]
        value_up = jnp.dot(v_in, wv_ref[...],
                           preferred_element_type=jnp.float32) + bv_ref[...]
        kh = split_heads(key_up)                     # [H, K, Dh] f32
        vh = split_heads(value_up)
        kup_ref[0] = kh.astype(kup_ref.dtype)        # cache layout [B, H, K, Dh]
        vup_ref[0] = vh.astype(vup_ref.dtype)
        kh_sc[...] = kh.astype(kh_sc.dtype)          # bf16 MXU operands
        vh_sc[...] = vh.astype(vh_sc.dtype)

    # ---- Q projection for this Q tile (full-width MXU matmul). ----
    q_in = query_ref[0].astype(jnp.bfloat16)         # [Qt, D]
    query_up = jnp.dot(q_in, wq_ref[...],
                       preferred_element_type=jnp.float32) + bq_ref[...]      # [Qt, H*Dh]
    query_up = query_up * scale
    qh = split_heads(query_up).astype(jnp.bfloat16)  # [H, Qt, Dh]

    # ---- head-batched attention (single contraction per stage). ----
    scores = jnp.einsum('hqd,hkd->hqk', qh, kh_sc[...],
                        preferred_element_type=jnp.float32)                   # [H, Qt, K]
    scores = scores - jnp.max(scores, axis=-1, keepdims=True)
    exp_s = jnp.exp(scores)
    denom = jnp.sum(exp_s, axis=-1, keepdims=True)
    attn = exp_s * pl.reciprocal(denom, approx=True)                          # softmax, f32

    top_attn_ref[0] = attn[0].astype(top_attn_ref.dtype)                      # head 0

    # dropout is identity in eval mode.
    ctx = jnp.einsum('hqk,hkd->hqd', attn.astype(jnp.bfloat16), vh_sc[...],
                     preferred_element_type=jnp.float32)                      # [H, Qt, Dh]

    # Final linear fused per head (wf_ref: [H, Dh, D]); summing over heads is
    # equivalent to combine_heads + [H*Dh, D] matmul, with no lane relayout.
    out_h = jnp.einsum('hqd,hde->hqe', ctx.astype(jnp.bfloat16), wf_ref[...],
                       preferred_element_type=jnp.float32)                    # [H, Qt, D]
    out = jnp.sum(out_h, axis=0) + bf_ref[...]
    out_ref[0] = out.astype(out_ref.dtype)


def multi_headed_attention(key, value, query, params, *,
                           head_count, dim_per_head, q_tile=256):
    """Pallas implementation of MultiHeadedAttention.forward (mask=None, no cache)."""
    B, K, D = key.shape
    Q = query.shape[1]
    H, Dh = head_count, dim_per_head
    HD = H * Dh

    QT = Q if Q <= q_tile else q_tile
    nq = pl.cdiv(Q, QT)

    # Host-side weight prep: bf16 MXU operands; final projection pre-split per
    # head so the kernel never has to merge head lanes back together.
    wk = params["wk"].astype(jnp.bfloat16)                       # [D, HD]
    wv = params["wv"].astype(jnp.bfloat16)
    wq = params["wq"].astype(jnp.bfloat16)
    wf = params["wf"].astype(jnp.bfloat16).reshape(H, Dh, D)     # [H, Dh, D]
    bk = params["bk"].astype(jnp.float32)                        # [1, HD]
    bv = params["bv"].astype(jnp.float32)
    bq = params["bq"].astype(jnp.float32)
    bf = params["bf"].astype(jnp.float32)                        # [1, D]

    kernel = functools.partial(_mha_kernel, head_count=H, dim_per_head=Dh)

    def _const_spec(arr):
        nd = arr.ndim
        return pl.BlockSpec(arr.shape, lambda b, q, _nd=nd: (0,) * _nd)

    out_shapes = (
        jax.ShapeDtypeStruct((B, Q, D), jnp.float32),     # output
        jax.ShapeDtypeStruct((B, Q, K), jnp.float32),     # top_attn (head 0)
        jax.ShapeDtypeStruct((B, H, K, Dh), jnp.float32), # key_up  (cache layout)
        jax.ShapeDtypeStruct((B, H, K, Dh), jnp.float32), # value_up (cache layout)
    )

    grid_spec = pltpu.PrefetchScalarGridSpec(
        num_scalar_prefetch=0,
        grid=(B, nq),
        in_specs=[
            pl.BlockSpec((1, K, D), lambda b, q: (b, 0, 0)),   # key   (resident over q)
            pl.BlockSpec((1, K, D), lambda b, q: (b, 0, 0)),   # value (resident over q)
            pl.BlockSpec((1, QT, D), lambda b, q: (b, q, 0)),  # query tile
            _const_spec(wk), _const_spec(bk),
            _const_spec(wv), _const_spec(bv),
            _const_spec(wq), _const_spec(bq),
            _const_spec(wf), _const_spec(bf),
        ],
        out_specs=[
            pl.BlockSpec((1, QT, D), lambda b, q: (b, q, 0)),        # output
            pl.BlockSpec((1, QT, K), lambda b, q: (b, q, 0)),        # top_attn
            pl.BlockSpec((1, H, K, Dh), lambda b, q: (b, 0, 0, 0)),  # key_up
            pl.BlockSpec((1, H, K, Dh), lambda b, q: (b, 0, 0, 0)),  # value_up
        ],
        scratch_shapes=[
            pltpu.VMEM((H, K, Dh), jnp.bfloat16),   # key_up   (bf16 operands)
            pltpu.VMEM((H, K, Dh), jnp.bfloat16),   # value_up (bf16 operands)
        ],
    )

    # Explicit VMEM budget derived from the block sizes (clamped so it is also
    # valid on v7x's 64 MiB VMEM).
    def _nbytes(shape, dt):
        return math.prod(shape) * jnp.dtype(dt).itemsize
    est = 0
    for shape, dt in [((1, K, D), key.dtype), ((1, K, D), value.dtype),
                      ((1, QT, D), query.dtype),
                      ((1, QT, D), jnp.float32), ((1, QT, K), jnp.float32),
                      ((1, H, K, Dh), jnp.float32), ((1, H, K, Dh), jnp.float32)]:
        est += 2 * _nbytes(shape, dt)                      # double-buffered blocks
    for arr in (wk, bk, wv, bv, wq, bq, wf, bf):
        est += 2 * _nbytes(arr.shape, arr.dtype)           # constant blocks
    est += 2 * _nbytes((H, K, Dh), jnp.bfloat16)           # persistent scratch
    vmem_limit = int(min(64 * 2**20, max(16 * 2**20, 2 * est)))

    output, top_attn, key_up, value_up = pl.pallas_call(
        kernel,
        out_shape=out_shapes,
        grid_spec=grid_spec,
        compiler_params=pltpu.CompilerParams(
            # batch axis -> megacore parallel; q-tile axis must stay sequential
            # because K/V projections are computed once per batch element into
            # scratch at q == 0 and reused by later q tiles.
            dimension_semantics=("parallel", "arbitrary"),
            vmem_limit_bytes=vmem_limit,
        ),
    )(key, value, query, wk, bk, wv, bv, wq, bq, wf, bf)

    return output, top_attn, [key_up, value_up]


def _reference(key, value, query, params, *, head_count, dim_per_head):
    """Pure-JAX f32 reference mirroring the PyTorch forward (eval mode, mask=None)."""
    B = key.shape[0]

    def split_heads(x):
        return x.reshape(B, -1, head_count, dim_per_head).transpose(0, 2, 1, 3)

    key_up = split_heads(key @ params["wk"] + params["bk"])
    value_up = split_heads(value @ params["wv"] + params["bv"])
    query_up = split_heads(query @ params["wq"] + params["bq"])
    query_up = query_up / math.sqrt(dim_per_head)

    scores = jnp.einsum("bhqd,bhkd->bhqk", query_up, key_up)
    attn = jax.nn.softmax(scores, axis=-1)
    context = jnp.einsum("bhqk,bhkd->bhqd", attn, value_up)
    context = context.transpose(0, 2, 1, 3).reshape(B, -1, head_count * dim_per_head)
    output = context @ params["wf"] + params["bf"]
    top_attn = attn[:, 0, :, :]
    return output, top_attn, key_up, value_up


if __name__ == "__main__":
    # Small deterministic configuration.
    batch = 2
    seq_len = 8        # key_len == query_len
    model_dim = 32
    head_count = 4
    dim_per_head = model_dim // head_count
    HD = head_count * dim_per_head

    root = jax.random.PRNGKey(0)
    ks = jax.random.split(root, 12)

    def linear_init(kw, kb, fan_in, fan_out):
        bound = 1.0 / math.sqrt(fan_in)
        w = jax.random.uniform(kw, (fan_in, fan_out), jnp.float32, -bound, bound)
        b = jax.random.uniform(kb, (1, fan_out), jnp.float32, -bound, bound)
        return w, b

    wk, bk = linear_init(ks[0], ks[1], model_dim, HD)
    wv, bv = linear_init(ks[2], ks[3], model_dim, HD)
    wq, bq = linear_init(ks[4], ks[5], model_dim, HD)
    wf, bf = linear_init(ks[6], ks[7], HD, model_dim)
    params = dict(wk=wk, bk=bk, wv=wv, bv=bv, wq=wq, bq=bq, wf=wf, bf=bf)

    key_in = jax.random.normal(ks[8], (batch, seq_len, model_dim), jnp.float32)
    value_in = jax.random.normal(ks[9], (batch, seq_len, model_dim), jnp.float32)
    query_in = jax.random.normal(ks[10], (batch, seq_len, model_dim), jnp.float32)

    output, top_attn, (key_up, value_up) = multi_headed_attention(
        key_in, value_in, query_in, params,
        head_count=head_count, dim_per_head=dim_per_head)
    jax.block_until_ready((output, top_attn, key_up, value_up))

    ref_out, ref_attn, ref_kup, ref_vup = _reference(
        key_in, value_in, query_in, params,
        head_count=head_count, dim_per_head=dim_per_head)

    # Loose tolerance: kernel matmuls run with bf16 operands on the MXU
    # (f32 accumulation) per the performance guidance; the reference is pure f32.
    tol = dict(atol=1e-1, rtol=1e-1)
    assert jnp.allclose(output, ref_out, **tol)
    assert jnp.allclose(top_attn, ref_attn, **tol)
    assert jnp.allclose(key_up, ref_kup, **tol)
    assert jnp.allclose(value_up, ref_vup, **tol)

    print("KERNEL_OK")
</pallas_src>

<mosaic_0001>
module attributes {stable_mosaic.version = 11 : i64} {
  func.func @_mha_kernel(%arg0: i32, %arg1: i32, %arg2: memref<1x8x32xf32, #tpu.memory_space<vmem>>, %arg3: memref<1x8x32xf32, #tpu.memory_space<vmem>>, %arg4: memref<1x8x32xf32, #tpu.memory_space<vmem>>, %arg5: memref<32x32xbf16, #tpu.memory_space<vmem>>, %arg6: memref<1x32xf32, #tpu.memory_space<vmem>>, %arg7: memref<32x32xbf16, #tpu.memory_space<vmem>>, %arg8: memref<1x32xf32, #tpu.memory_space<vmem>>, %arg9: memref<32x32xbf16, #tpu.memory_space<vmem>>, %arg10: memref<1x32xf32, #tpu.memory_space<vmem>>, %arg11: memref<4x8x32xbf16, #tpu.memory_space<vmem>>, %arg12: memref<1x32xf32, #tpu.memory_space<vmem>>, %arg13: memref<1x8x32xf32, #tpu.memory_space<vmem>>, %arg14: memref<1x8x8xf32, #tpu.memory_space<vmem>>, %arg15: memref<1x4x8x8xf32, #tpu.memory_space<vmem>>, %arg16: memref<1x4x8x8xf32, #tpu.memory_space<vmem>>, %arg17: memref<4x8x8xbf16, #tpu.memory_space<vmem>>, %arg18: memref<4x8x8xbf16, #tpu.memory_space<vmem>>) attributes {dimension_semantics = [#tpu.dimension_semantics<parallel>, #tpu.dimension_semantics<arbitrary>], iteration_bounds = array<i64: 2, 1>, scalar_prefetch = 0 : i64, scratch_operands = 2 : i64, tpu.core_type = #tpu.core_type<tc>, window_params = [{transform_indices = @transform_0, window_bounds = array<i64: 1, 8, 32>}, {transform_indices = @transform_1, window_bounds = array<i64: 1, 8, 32>}, {transform_indices = @transform_2, window_bounds = array<i64: 1, 8, 32>}, {pipeline_mode = #tpu.pipeline_mode<synchronous>, transform_indices = @transform_3, window_bounds = array<i64: 32, 32>}, {pipeline_mode = #tpu.pipeline_mode<synchronous>, transform_indices = @transform_4, window_bounds = array<i64: 1, 32>}, {pipeline_mode = #tpu.pipeline_mode<synchronous>, transform_indices = @transform_5, window_bounds = array<i64: 32, 32>}, {pipeline_mode = #tpu.pipeline_mode<synchronous>, transform_indices = @transform_6, window_bounds = array<i64: 1, 32>}, {pipeline_mode = #tpu.pipeline_mode<synchronous>, transform_indices = @transform_7, window_bounds = array<i64: 32, 32>}, {pipeline_mode = #tpu.pipeline_mode<synchronous>, transform_indices = @transform_8, window_bounds = array<i64: 1, 32>}, {pipeline_mode = #tpu.pipeline_mode<synchronous>, transform_indices = @transform_9, window_bounds = array<i64: 4, 8, 32>}, {pipeline_mode = #tpu.pipeline_mode<synchronous>, transform_indices = @transform_10, window_bounds = array<i64: 1, 32>}, {transform_indices = @transform_11, window_bounds = array<i64: 1, 8, 32>}, {transform_indices = @transform_12, window_bounds = array<i64: 1, 8, 8>}, {transform_indices = @transform_13, window_bounds = array<i64: 1, 4, 8, 8>}, {transform_indices = @transform_14, window_bounds = array<i64: 1, 4, 8, 8>}]} {
    %c0_i32 = arith.constant 0 : i32
    %0 = arith.cmpi eq, %arg1, %c0_i32 : i32
    %1 = arith.extui %0 : i1 to i32
    %c0_i32_0 = arith.constant 0 : i32
    %2 = arith.cmpi ne, %1, %c0_i32_0 : i32
    scf.if %2 {
      %c0_31 = arith.constant 0 : index
      %c0_32 = arith.constant 0 : index
      %c0_33 = arith.constant 0 : index
      %53 = vector.load %arg2[%c0_31, %c0_32, %c0_33] : memref<1x8x32xf32, #tpu.memory_space<vmem>>, vector<1x8x32xf32>
      %54 = vector.shape_cast %53 : vector<1x8x32xf32> to vector<8x32xf32>
      %55 = arith.truncf %54 : vector<8x32xf32> to vector<8x32xbf16>
      %c0_34 = arith.constant 0 : index
      %c0_35 = arith.constant 0 : index
      %c0_36 = arith.constant 0 : index
      %56 = vector.load %arg3[%c0_34, %c0_35, %c0_36] : memref<1x8x32xf32, #tpu.memory_space<vmem>>, vector<1x8x32xf32>
      %57 = vector.shape_cast %56 : vector<1x8x32xf32> to vector<8x32xf32>
      %58 = arith.truncf %57 : vector<8x32xf32> to vector<8x32xbf16>
      %c0_37 = arith.constant 0 : index
      %c0_38 = arith.constant 0 : index
      %59 = vector.load %arg5[%c0_37, %c0_38] : memref<32x32xbf16, #tpu.memory_space<vmem>>, vector<32x32xbf16>
      %cst_39 = arith.constant dense<0.000000e+00> : vector<8x32xf32>
      %60 = tpu.matmul %55, %59, %cst_39 {dimension_numbers = #tpu.dot_dimension_numbers<[1], [0], [0], [1], [0, 0, 1, 1], [], []>} : vector<8x32xbf16>, vector<32x32xbf16>, vector<8x32xf32> -> vector<8x32xf32>
      %c0_40 = arith.constant 0 : index
      %c0_41 = arith.constant 0 : index
      %61 = vector.load %arg6[%c0_40, %c0_41] : memref<1x32xf32, #tpu.memory_space<vmem>>, vector<1x32xf32>
      %62 = vector.broadcast %61 : vector<1x32xf32> to vector<8x32xf32>
      %63 = arith.addf %60, %62 : vector<8x32xf32>
      %c0_42 = arith.constant 0 : index
      %c0_43 = arith.constant 0 : index
      %64 = vector.load %arg7[%c0_42, %c0_43] : memref<32x32xbf16, #tpu.memory_space<vmem>>, vector<32x32xbf16>
      %cst_44 = arith.constant dense<0.000000e+00> : vector<8x32xf32>
      %65 = tpu.matmul %58, %64, %cst_44 {dimension_numbers = #tpu.dot_dimension_numbers<[1], [0], [0], [1], [0, 0, 1, 1], [], []>} : vector<8x32xbf16>, vector<32x32xbf16>, vector<8x32xf32> -> vector<8x32xf32>
      %c0_45 = arith.constant 0 : index
      %c0_46 = arith.constant 0 : index
      %66 = vector.load %arg8[%c0_45, %c0_46] : memref<1x32xf32, #tpu.memory_space<vmem>>, vector<1x32xf32>
      %67 = vector.broadcast %66 : vector<1x32xf32> to vector<8x32xf32>
      %68 = arith.addf %65, %67 : vector<8x32xf32>
      %69 = vector.extract_strided_slice %63 {offsets = [0, 0], sizes = [8, 8], strides = [1, 1]} : vector<8x32xf32> to vector<8x8xf32>
      %70 = vector.extract_strided_slice %63 {offsets = [0, 8], sizes = [8, 8], strides = [1, 1]} : vector<8x32xf32> to vector<8x8xf32>
      %71 = vector.extract_strided_slice %63 {offsets = [0, 16], sizes = [8, 8], strides = [1, 1]} : vector<8x32xf32> to vector<8x8xf32>
      %72 = vector.extract_strided_slice %63 {offsets = [0, 24], sizes = [8, 8], strides = [1, 1]} : vector<8x32xf32> to vector<8x8xf32>
      %73 = vector.shape_cast %69 : vector<8x8xf32> to vector<1x8x8xf32>
      %74 = vector.shape_cast %70 : vector<8x8xf32> to vector<1x8x8xf32>
      %75 = vector.shape_cast %71 : vector<8x8xf32> to vector<1x8x8xf32>
      %76 = vector.shape_cast %72 : vector<8x8xf32> to vector<1x8x8xf32>
      %77 = tpu.concatenate %73, %74, %75, %76 in 0 : vector<1x8x8xf32>, vector<1x8x8xf32>, vector<1x8x8xf32>, vector<1x8x8xf32> -> vector<4x8x8xf32>
      %78 = vector.extract_strided_slice %68 {offsets = [0, 0], sizes = [8, 8], strides = [1, 1]} : vector<8x32xf32> to vector<8x8xf32>
      %79 = vector.extract_strided_slice %68 {offsets = [0, 8], sizes = [8, 8], strides = [1, 1]} : vector<8x32xf32> to vector<8x8xf32>
      %80 = vector.extract_strided_slice %68 {offsets = [0, 16], sizes = [8, 8], strides = [1, 1]} : vector<8x32xf32> to vector<8x8xf32>
      %81 = vector.extract_strided_slice %68 {offsets = [0, 24], sizes = [8, 8], strides = [1, 1]} : vector<8x32xf32> to vector<8x8xf32>
      %82 = vector.shape_cast %78 : vector<8x8xf32> to vector<1x8x8xf32>
      %83 = vector.shape_cast %79 : vector<8x8xf32> to vector<1x8x8xf32>
      %84 = vector.shape_cast %80 : vector<8x8xf32> to vector<1x8x8xf32>
      %85 = vector.shape_cast %81 : vector<8x8xf32> to vector<1x8x8xf32>
      %86 = tpu.concatenate %82, %83, %84, %85 in 0 : vector<1x8x8xf32>, vector<1x8x8xf32>, vector<1x8x8xf32>, vector<1x8x8xf32> -> vector<4x8x8xf32>
      %c0_47 = arith.constant 0 : index
      %c0_48 = arith.constant 0 : index
      %c0_49 = arith.constant 0 : index
      %c0_50 = arith.constant 0 : index
      %87 = vector.load %arg15[%c0_47, %c0_48, %c0_49, %c0_50] : memref<1x4x8x8xf32, #tpu.memory_space<vmem>>, vector<1x4x8x8xf32>
      %88 = vector.shape_cast %87 : vector<1x4x8x8xf32> to vector<4x8x8xf32>
      %89 = vector.shape_cast %77 : vector<4x8x8xf32> to vector<1x4x8x8xf32>
      tpu.vector_store %arg15[%c0_47, %c0_48, %c0_49, %c0_50], %89 {strides = array<i32>} : memref<1x4x8x8xf32, #tpu.memory_space<vmem>>, vector<1x4x8x8xf32>,
      %c0_51 = arith.constant 0 : index
      %c0_52 = arith.constant 0 : index
      %c0_53 = arith.constant 0 : index
      %c0_54 = arith.constant 0 : index
      %90 = vector.load %arg16[%c0_51, %c0_52, %c0_53, %c0_54] : memref<1x4x8x8xf32, #tpu.memory_space<vmem>>, vector<1x4x8x8xf32>
      %91 = vector.shape_cast %90 : vector<1x4x8x8xf32> to vector<4x8x8xf32>
      %92 = vector.shape_cast %86 : vector<4x8x8xf32> to vector<1x4x8x8xf32>
      tpu.vector_store %arg16[%c0_51, %c0_52, %c0_53, %c0_54], %92 {strides = array<i32>} : memref<1x4x8x8xf32, #tpu.memory_space<vmem>>, vector<1x4x8x8xf32>,
      %93 = arith.truncf %77 : vector<4x8x8xf32> to vector<4x8x8xbf16>
      %c0_55 = arith.constant 0 : index
      %c0_56 = arith.constant 0 : index
      %c0_57 = arith.constant 0 : index
      %94 = vector.load %arg17[%c0_55, %c0_56, %c0_57] : memref<4x8x8xbf16, #tpu.memory_space<vmem>>, vector<4x8x8xbf16>
      tpu.vector_store %arg17[%c0_55, %c0_56, %c0_57], %93 {strides = array<i32>} : memref<4x8x8xbf16, #tpu.memory_space<vmem>>, vector<4x8x8xbf16>,
      %95 = arith.truncf %86 : vector<4x8x8xf32> to vector<4x8x8xbf16>
      %c0_58 = arith.constant 0 : index
      %c0_59 = arith.constant 0 : index
      %c0_60 = arith.constant 0 : index
      %96 = vector.load %arg18[%c0_58, %c0_59, %c0_60] : memref<4x8x8xbf16, #tpu.memory_space<vmem>>, vector<4x8x8xbf16>
      tpu.vector_store %arg18[%c0_58, %c0_59, %c0_60], %95 {strides = array<i32>} : memref<4x8x8xbf16, #tpu.memory_space<vmem>>, vector<4x8x8xbf16>,
    } else {
    }
    %c0 = arith.constant 0 : index
    %c0_1 = arith.constant 0 : index
    %c0_2 = arith.constant 0 : index
    %3 = vector.load %arg4[%c0, %c0_1, %c0_2] : memref<1x8x32xf32, #tpu.memory_space<vmem>>, vector<1x8x32xf32>
    %4 = vector.shape_cast %3 : vector<1x8x32xf32> to vector<8x32xf32>
    %5 = arith.truncf %4 : vector<8x32xf32> to vector<8x32xbf16>
    %c0_3 = arith.constant 0 : index
    %c0_4 = arith.constant 0 : index
    %6 = vector.load %arg9[%c0_3, %c0_4] : memref<32x32xbf16, #tpu.memory_space<vmem>>, vector<32x32xbf16>
    %cst = arith.constant dense<0.000000e+00> : vector<8x32xf32>
    %7 = tpu.matmul %5, %6, %cst {dimension_numbers = #tpu.dot_dimension_numbers<[1], [0], [0], [1], [0, 0, 1, 1], [], []>} : vector<8x32xbf16>, vector<32x32xbf16>, vector<8x32xf32> -> vector<8x32xf32>
    %c0_5 = arith.constant 0 : index
    %c0_6 = arith.constant 0 : index
    %8 = vector.load %arg10[%c0_5, %c0_6] : memref<1x32xf32, #tpu.memory_space<vmem>>, vector<1x32xf32>
    %9 = vector.broadcast %8 : vector<1x32xf32> to vector<8x32xf32>
    %10 = arith.addf %7, %9 : vector<8x32xf32>
    %cst_7 = arith.constant 0.353553385 : f32
    %11 = vector.broadcast %cst_7 : f32 to vector<8x32xf32>
    %12 = arith.mulf %10, %11 : vector<8x32xf32>
    %13 = vector.extract_strided_slice %12 {offsets = [0, 0], sizes = [8, 8], strides = [1, 1]} : vector<8x32xf32> to vector<8x8xf32>
    %14 = vector.extract_strided_slice %12 {offsets = [0, 8], sizes = [8, 8], strides = [1, 1]} : vector<8x32xf32> to vector<8x8xf32>
    %15 = vector.extract_strided_slice %12 {offsets = [0, 16], sizes = [8, 8], strides = [1, 1]} : vector<8x32xf32> to vector<8x8xf32>
    %16 = vector.extract_strided_slice %12 {offsets = [0, 24], sizes = [8, 8], strides = [1, 1]} : vector<8x32xf32> to vector<8x8xf32>
    %17 = vector.shape_cast %13 : vector<8x8xf32> to vector<1x8x8xf32>
    %18 = vector.shape_cast %14 : vector<8x8xf32> to vector<1x8x8xf32>
    %19 = vector.shape_cast %15 : vector<8x8xf32> to vector<1x8x8xf32>
    %20 = vector.shape_cast %16 : vector<8x8xf32> to vector<1x8x8xf32>
    %21 = tpu.concatenate %17, %18, %19, %20 in 0 : vector<1x8x8xf32>, vector<1x8x8xf32>, vector<1x8x8xf32>, vector<1x8x8xf32> -> vector<4x8x8xf32>
    %22 = arith.truncf %21 : vector<4x8x8xf32> to vector<4x8x8xbf16>
    %c0_8 = arith.constant 0 : index
    %c0_9 = arith.constant 0 : index
    %c0_10 = arith.constant 0 : index
    %23 = vector.load %arg17[%c0_8, %c0_9, %c0_10] : memref<4x8x8xbf16, #tpu.memory_space<vmem>>, vector<4x8x8xbf16>
    "tpu.trace_start"() <{level = 10 : i32, message = "hqd,hkd->hqk"}> : () -> ()
    %cst_11 = arith.constant dense<0.000000e+00> : vector<4x8x8xf32>
    %24 = tpu.matmul %22, %23, %cst_11 {dimension_numbers = #tpu.dot_dimension_numbers<[2], [2], [1], [1], [0, 0, 0, 1, 1, 1], [0], [0]>} : vector<4x8x8xbf16>, vector<4x8x8xbf16>, vector<4x8x8xf32> -> vector<4x8x8xf32>
    "tpu.trace_stop"() : () -> ()
    %cst_12 = arith.constant dense<0xFF800000> : vector<4x8xf32>
    %25 = vector.multi_reduction <maximumf>, %24, %cst_12 [2] : vector<4x8x8xf32> to vector<4x8xf32>
    %26 = vector.shape_cast %25 : vector<4x8xf32> to vector<4x8x1xf32>
    %27 = vector.broadcast %26 : vector<4x8x1xf32> to vector<4x8x8xf32>
    %28 = arith.subf %24, %27 : vector<4x8x8xf32>
    %29 = math.exp %28 : vector<4x8x8xf32>
    %cst_13 = arith.constant dense<0.000000e+00> : vector<4x8xf32>
    %30 = vector.multi_reduction <add>, %29, %cst_13 [2] : vector<4x8x8xf32> to vector<4x8xf32>
    %31 = vector.shape_cast %30 : vector<4x8xf32> to vector<4x8x1xf32>
    %32 = tpu.reciprocal %31 {approx = true} : vector<4x8x1xf32> -> vector<4x8x1xf32>
    %33 = vector.broadcast %32 : vector<4x8x1xf32> to vector<4x8x8xf32>
    %34 = arith.mulf %29, %33 : vector<4x8x8xf32>
    %35 = vector.extract_strided_slice %34 {offsets = [0, 0, 0], sizes = [1, 8, 8], strides = [1, 1, 1]} : vector<4x8x8xf32> to vector<1x8x8xf32>
    %36 = vector.shape_cast %35 : vector<1x8x8xf32> to vector<8x8xf32>
    %c0_14 = arith.constant 0 : index
    %c0_15 = arith.constant 0 : index
    %c0_16 = arith.constant 0 : index
    %37 = vector.load %arg14[%c0_14, %c0_15, %c0_16] : memref<1x8x8xf32, #tpu.memory_space<vmem>>, vector<1x8x8xf32>
    %38 = vector.shape_cast %37 : vector<1x8x8xf32> to vector<8x8xf32>
    %39 = vector.shape_cast %36 : vector<8x8xf32> to vector<1x8x8xf32>
    tpu.vector_store %arg14[%c0_14, %c0_15, %c0_16], %39 {strides = array<i32>} : memref<1x8x8xf32, #tpu.memory_space<vmem>>, vector<1x8x8xf32>,
    %40 = arith.truncf %34 : vector<4x8x8xf32> to vector<4x8x8xbf16>
    %c0_17 = arith.constant 0 : index
    %c0_18 = arith.constant 0 : index
    %c0_19 = arith.constant 0 : index
    %41 = vector.load %arg18[%c0_17, %c0_18, %c0_19] : memref<4x8x8xbf16, #tpu.memory_space<vmem>>, vector<4x8x8xbf16>
    "tpu.trace_start"() <{level = 10 : i32, message = "hqk,hkd->hqd"}> : () -> ()
    %cst_20 = arith.constant dense<0.000000e+00> : vector<4x8x8xf32>
    %42 = tpu.matmul %40, %41, %cst_20 {dimension_numbers = #tpu.dot_dimension_numbers<[2], [1], [1], [2], [0, 0, 0, 1, 1, 2], [0], [0]>} : vector<4x8x8xbf16>, vector<4x8x8xbf16>, vector<4x8x8xf32> -> vector<4x8x8xf32>
    "tpu.trace_stop"() : () -> ()
    %43 = arith.truncf %42 : vector<4x8x8xf32> to vector<4x8x8xbf16>
    %c0_21 = arith.constant 0 : index
    %c0_22 = arith.constant 0 : index
    %c0_23 = arith.constant 0 : index
    %44 = vector.load %arg11[%c0_21, %c0_22, %c0_23] : memref<4x8x32xbf16, #tpu.memory_space<vmem>>, vector<4x8x32xbf16>
    "tpu.trace_start"() <{level = 10 : i32, message = "hqd,hde->hqe"}> : () -> ()
    %cst_24 = arith.constant dense<0.000000e+00> : vector<4x8x32xf32>
    %45 = tpu.matmul %43, %44, %cst_24 {dimension_numbers = #tpu.dot_dimension_numbers<[2], [1], [1], [2], [0, 0, 0, 1, 1, 2], [0], [0]>} : vector<4x8x8xbf16>, vector<4x8x32xbf16>, vector<4x8x32xf32> -> vector<4x8x32xf32>
    "tpu.trace_stop"() : () -> ()
    %cst_25 = arith.constant dense<0.000000e+00> : vector<8x32xf32>
    %46 = vector.multi_reduction <add>, %45, %cst_25 [0] : vector<4x8x32xf32> to vector<8x32xf32>
    %c0_26 = arith.constant 0 : index
    %c0_27 = arith.constant 0 : index
    %47 = vector.load %arg12[%c0_26, %c0_27] : memref<1x32xf32, #tpu.memory_space<vmem>>, vector<1x32xf32>
    %48 = vector.broadcast %47 : vector<1x32xf32> to vector<8x32xf32>
    %49 = arith.addf %46, %48 : vector<8x32xf32>
    %c0_28 = arith.constant 0 : index
    %c0_29 = arith.constant 0 : index
    %c0_30 = arith.constant 0 : index
    %50 = vector.load %arg13[%c0_28, %c0_29, %c0_30] : memref<1x8x32xf32, #tpu.memory_space<vmem>>, vector<1x8x32xf32>
    %51 = vector.shape_cast %50 : vector<1x8x32xf32> to vector<8x32xf32>
    %52 = vector.shape_cast %49 : vector<8x32xf32> to vector<1x8x32xf32>
    tpu.vector_store %arg13[%c0_28, %c0_29, %c0_30], %52 {strides = array<i32>} : memref<1x8x32xf32, #tpu.memory_space<vmem>>, vector<1x8x32xf32>,
    return
  }
  func.func @transform_0(%arg0: i32, %arg1: i32) -> (i32, i32, i32) {
    %c0_i32 = arith.constant 0 : i32
    %c0_i32_0 = arith.constant 0 : i32
    %c0_i32_1 = arith.constant 0 : i32
    return %arg0, %c0_i32, %c0_i32_0 : i32, i32, i32
  }
  func.func @transform_1(%arg0: i32, %arg1: i32) -> (i32, i32, i32) {
    %c0_i32 = arith.constant 0 : i32
    %c0_i32_0 = arith.constant 0 : i32
    %c0_i32_1 = arith.constant 0 : i32
    return %arg0, %c0_i32, %c0_i32_0 : i32, i32, i32
  }
  func.func @transform_2(%arg0: i32, %arg1: i32) -> (i32, i32, i32) {
    %c0_i32 = arith.constant 0 : i32
    %c0_i32_0 = arith.constant 0 : i32
    return %arg0, %arg1, %c0_i32 : i32, i32, i32
  }
  func.func @transform_3(%arg0: i32, %arg1: i32) -> (i32, i32) {
    %c0_i32 = arith.constant 0 : i32
    %c0_i32_0 = arith.constant 0 : i32
    %c0_i32_1 = arith.constant 0 : i32
    return %c0_i32, %c0_i32_0 : i32, i32
  }
  func.func @transform_4(%arg0: i32, %arg1: i32) -> (i32, i32) {
    %c0_i32 = arith.constant 0 : i32
    %c0_i32_0 = arith.constant 0 : i32
    %c0_i32_1 = arith.constant 0 : i32
    return %c0_i32, %c0_i32_0 : i32, i32
  }
  func.func @transform_5(%arg0: i32, %arg1: i32) -> (i32, i32) {
    %c0_i32 = arith.constant 0 : i32
    %c0_i32_0 = arith.constant 0 : i32
    %c0_i32_1 = arith.constant 0 : i32
    return %c0_i32, %c0_i32_0 : i32, i32
  }
  func.func @transform_6(%arg0: i32, %arg1: i32) -> (i32, i32) {
    %c0_i32 = arith.constant 0 : i32
    %c0_i32_0 = arith.constant 0 : i32
    %c0_i32_1 = arith.constant 0 : i32
    return %c0_i32, %c0_i32_0 : i32, i32
  }
  func.func @transform_7(%arg0: i32, %arg1: i32) -> (i32, i32) {
    %c0_i32 = arith.constant 0 : i32
    %c0_i32_0 = arith.constant 0 : i32
    %c0_i32_1 = arith.constant 0 : i32
    return %c0_i32, %c0_i32_0 : i32, i32
  }
  func.func @transform_8(%arg0: i32, %arg1: i32) -> (i32, i32) {
    %c0_i32 = arith.constant 0 : i32
    %c0_i32_0 = arith.constant 0 : i32
    %c0_i32_1 = arith.constant 0 : i32
    return %c0_i32, %c0_i32_0 : i32, i32
  }
  func.func @transform_9(%arg0: i32, %arg1: i32) -> (i32, i32, i32) {
    %c0_i32 = arith.constant 0 : i32
    %c0_i32_0 = arith.constant 0 : i32
    %c0_i32_1 = arith.constant 0 : i32
    %c0_i32_2 = arith.constant 0 : i32
    return %c0_i32, %c0_i32_0, %c0_i32_1 : i32, i32, i32
  }
  func.func @transform_10(%arg0: i32, %arg1: i32) -> (i32, i32) {
    %c0_i32 = arith.constant 0 : i32
    %c0_i32_0 = arith.constant 0 : i32
    %c0_i32_1 = arith.constant 0 : i32
    return %c0_i32, %c0_i32_0 : i32, i32
  }
  func.func @transform_11(%arg0: i32, %arg1: i32) -> (i32, i32, i32) {
    %c0_i32 = arith.constant 0 : i32
    %c0_i32_0 = arith.constant 0 : i32
    return %arg0, %arg1, %c0_i32 : i32, i32, i32
  }
  func.func @transform_12(%arg0: i32, %arg1: i32) -> (i32, i32, i32) {
    %c0_i32 = arith.constant 0 : i32
    %c0_i32_0 = arith.constant 0 : i32
    return %arg0, %arg1, %c0_i32 : i32, i32, i32
  }
  func.func @transform_13(%arg0: i32, %arg1: i32) -> (i32, i32, i32, i32) {
    %c0_i32 = arith.constant 0 : i32
    %c0_i32_0 = arith.constant 0 : i32
    %c0_i32_1 = arith.constant 0 : i32
    %c0_i32_2 = arith.constant 0 : i32
    return %arg0, %c0_i32, %c0_i32_0, %c0_i32_1 : i32, i32, i32, i32
  }
  func.func @transform_14(%arg0: i32, %arg1: i32) -> (i32, i32, i32, i32) {
    %c0_i32 = arith.constant 0 : i32
    %c0_i32_0 = arith.constant 0 : i32
    %c0_i32_1 = arith.constant 0 : i32
    %c0_i32_2 = arith.constant 0 : i32
    return %arg0, %c0_i32, %c0_i32_0, %c0_i32_1 : i32, i32, i32, i32
  }
}

</mosaic_0001>

<bundles_post_ra>
// kernel: tpu_custom_call.1
= control target key start
LH: loop header
LB: loop body
LE: loop exit
PB: predicated region body
PF: predicated region fallthrough
CT: control target
= control target key end

     0   :  { %s3293_s0 = inlined_call_operand.hbm [shape: f32[2,8,32], index: 0, kind: input, shape index: {}]   ;;  %s3294_s1 = inlined_call_operand.hbm [shape: f32[2,8,32], index: 1, kind: input, shape index: {}]   ;;  %s3295_s2 = inlined_call_operand.hbm [shape: f32[2,8,32], index: 2, kind: input, shape index: {}]   ;;  %s3296_s3 = inlined_call_operand.hbm [shape: bf16[32,32], index: 3, kind: input, shape index: {}]   ;;  %s3297_s4 = inlined_call_operand.vmem [shape: f32[1,32], index: 4, kind: input, shape index: {}]   ;;  %s3298_s5 = inlined_call_operand.vmem [shape: bf16[32,32], index: 5, kind: input, shape index: {}]   ;;  %s3299_s6 = inlined_call_operand.vmem [shape: f32[1,32], index: 6, kind: input, shape index: {}]   ;;  %s3300_s7 = inlined_call_operand.hbm [shape: bf16[32,32], index: 7, kind: input, shape index: {}]   ;;  %s3301_s8 = inlined_call_operand.hbm [shape: f32[1,32], index: 8, kind: input, shape index: {}]   ;;  %s3302_s9 = inlined_call_operand.vmem [shape: bf16[4,8,32], index: 9, kind: input, shape index: {}]   ;;  %s3303_s10 = inlined_call_operand.vmem [shape: f32[1,32], index: 10, kind: input, shape index: {}]   ;;  %s3304_s11 = inlined_call_operand.hbm [shape: f32[2,8,32], index: 11, kind: output, shape index: {0}]   ;;  %s3305_s12 = inlined_call_operand.hbm [shape: f32[2,8,8], index: 12, kind: output, shape index: {1}]   ;;  %s3306_s13 = inlined_call_operand.hbm [shape: f32[2,4,8,8], index: 13, kind: output, shape index: {2}]   ;;  %s3307_s14 = inlined_call_operand.hbm [shape: f32[2,4,8,8], index: 14, kind: output, shape index: {3}]  }
   0x1   :  { %3339 = sst [smem:[#allocation36_spill]] %s3294_s1 }
   0x2   :  { %3340 = sst [smem:[#allocation37_spill]] %s3296_s3 }
   0x3   :  { %3341 = sst [smem:[#allocation38_spill]] %s3297_s4 }
   0x4   :  { %3342 = sst [smem:[#allocation39_spill]] %s3299_s6 }
   0x5   :  { %3343 = sst [smem:[#allocation40_spill]] %s3302_s9 }
   0x6   :  { %3344 = sst [smem:[#allocation41_spill]] %s3303_s10 }
   0x7   :  { %3345 = sst [smem:[#allocation42_spill]] %s3304_s11 }
   0x8   :  { %3346 = sst [smem:[#allocation43_spill]] %s3305_s12 }
   0x9   :  { %3347 = sst [smem:[#allocation44_spill]] %s3306_s13 }
   0xa   :  { %3348 = sst [smem:[#allocation45_spill]] %s3307_s14 }
   0xb   :  { %20 = vsyncpa [#allocation5], 0 }
   0xc   :  { %22 = vsyncpa [#allocation5 + $0x1], 0 }
   0xd   :  { %23 = vsyncpa [#allocation8], 0 }
   0xe   :  { %25 = vsyncpa [#allocation8 + $0x1], 0 }
   0xf   :  { %26 = vsyncpa [#allocation11], 0 }
  0x10   :  { %27 = vsyncpa [#allocation14], 0 }
  0x11   :  { %28 = vsyncpa [#allocation6], 0 }
  0x12   :  { %30 = vsyncpa [#allocation6 + $0x1], 0 }
  0x13   :  { %31 = vsyncpa [#allocation17], 0 }
  0x14   :  { %33 = vsyncpa [#allocation17 + $0x1], 0 }
  0x15   :  { %34 = vsyncpa [#allocation20], 0 }
  0x16   :  { %36 = vsyncpa [#allocation20 + $0x1], 0  ;;  %s2669_s29 = smov 0   ;;  %s2671_s30 = smov 0  }
  0x17   :  { %s2673_s15 = smov 0   ;;  %s2675_s16 = smov 0  }
  0x18   :  { %s2677_s17 = smov 0   ;;  %s2679_s18 = smov 0  }
  0x19 LB: > { %3349 = sst [smem:[#allocation28_spill]] %s2553_s29  ;;  %s2700_s19 = sadd.s32 4294967295, %s2573_s18   ;;  %s2573_s18 = sphi %s2679_s18, %s42_s18   ;;  %s2569_s17 = sphi %s2677_s17, %s3409_s17   ;;  %s2565_s16 = sphi %s2675_s16, %s3404_s16   ;;  %s2561_s15 = sphi %s2673_s15, %s3408_s15   ;;  %s2557_s30 = sphi %s2671_s30, %s3407_s30   ;;  %s2553_s29 = sphi %s2669_s29, %s3406_s29  }
  0x1a   : > { %3350 = sst [smem:[#allocation29_spill]] %s2565_s16  ;;  %s3308_s20 = sadd.s32 4294967294, %s2573_s18  }
  0x1b   : > { %3351 = sst [smem:[#allocation30_spill]] %s2569_s17  ;;  %p74_p0 = scmp.ne.s32.totalorder %s2557_s30, %s2553_s29 }
  0x1c   : > { %3352 = sst [smem:[#allocation31_spill]] %s2573_s18  ;;  %p3313_p1 = scmp.eq.s32.totalorder %s2700_s19, 0 }
  0x1d   : > { %p328_p3 = scmp.eq.s32.totalorder %s3308_s20, 1  ;;  %p1874_p5 = scmp.ge.s32.totalorder %s2573_s18, 1 }
  0x1e   : > { %p2711_p4 = por %p3313_p1, %p74_p0  ;;  %p415_p7 = scmp.lt.s32.totalorder %s2573_s18, 3 }
  0x1f   : > { %p2716_p6 = por %p328_p3, %p74_p0  ;;  %s2575_s24 = smov [#allocation10]  }
  0x20   : > { %s3353_s21 = scalar_select %p2711_p4, 1, 0 }
  0x21   : > { %s3354_s22 = scalar_select %p2716_p6, 1, 0 }
  0x22   : > { %p2721_p8 = pnand %p1874_p5, %p415_p7  ;;  %s427_s25 = sshll.u32 %s2575_s24, 4  ;;  %s428_s25 = int_to_ptr.vmem [resolvable:$true] %s427_s25 }
  0x23   : > { %3355 = sst [smem:[#allocation32_spill]] %s3354_s22  ;;  %s54_s27 = sadd.s32 1, %s2569_s17 }
  0x24   : > { %s3356_s23 = scalar_select %p2721_p8, 1, 0 }
  0x25   : > { %p2090_p9 = pneg %p2721_p8  ;;  %s3358_s3 = sld [smem:[#allocation37_spill]] }
  0x27   : > { %p2730_p11 = pnand %p2090_p9, %p3313_p1 }
  0x29   : > { %s3357_s26 = scalar_select %p2730_p11, 1, 0 }
  0x2a   : > { %p2743_p13 = pneg %p2730_p11 }
  0x2b   : > { %s2213_s22 = scalar_lea.hbm %s3358_s3, 256 }
  0x2c   : > { %p2214_p12 = scmp.ne.s32.totalorder %s3358_s3, %s2213_s22  ;;  %p2220_p5 = scmp.lt.u32.totalorder %s2213_s22, %s3358_s3 }
  0x2d   : > { %s3359_s24 = scalar_select %p2743_p13, 1, 0 }
  0x2e   : > { %p2216_p0 = pnand %p2743_p13, %p2214_p12 }
  0x30   : > { %p2217_p3 = pneg %p2216_p0 }
  0x32   : > { %p2222_p7 = pnand %p2220_p5, %p2217_p3 }
  0x34   : > { %2225 = shalt.err (!%p2222_p7)
}
  0x35   : > { %s2226_s20 = scalar_lea.vmem %s428_s25, 256  ;;  %p2234_p2 = scmp.lt.s32.totalorder %s428_s25, %s428_s25 }
  0x36   : > { %p2227_p9 = scmp.ne.s32.totalorder %s428_s25, %s2226_s20  ;;  %p2235_p6 = scmp.lt.s32.totalorder %s2226_s20, %s2226_s20 }
  0x38   : > { %p2229_p10 = pnand %p2227_p9, %p2743_p13  ;;  %p2236_p4 = por %p2235_p6, %p2234_p2 }
  0x3a   : > { %p2230_p1 = pneg %p2229_p10 }
  0x3c   : > { %p2237_p8 = pnand %p2236_p4, %p2230_p1 }
  0x3e   : > { %2240 = shalt.err (!%p2237_p8)
}
  0x3f   : > { %s3317_s11 = smov 64   ;;  %s3318_s10 = smov 4  }
  0x40   : > { %2093 = dma.hbm_to_vmem [thread:$0]  (!%p2730_p11), %s3358_s3, 256, %s428_s25, [#allocation11], %s3317_s11, %s3317_s11, %s3318_s10  }
  0x41   : > { %p56_p1 = scmp.ge.s32.totalorder %s54_s27, 2  ;;  %s61_s22 = sadd.s32 1, %s2561_s15 }
  0x42   : > { %p68_p2 = scmp.ne.s32.totalorder %s2561_s15, %s2557_s30  ;;  %p69_p4 = scmp.eq.s32.totalorder %s2573_s18, 0 }
  0x43   : > { %s3411_s27 = smov (%p56_p1, %s54_s27), 0  ;;  %p3361_p8 = scmp.eq.s32.totalorder %s2700_s19, 1 }
  0x44   : > { %3360 = sst [smem:[#allocation33_spill]] %s3411_s27  ;;  %p70_p6 = por %p69_p4, %p68_p2 }
  0x45   : > { %p2770_p10 = por %p3361_p8, %p68_p2  ;;  %s58_s20 = ssub.s32 %s2569_s17, %s3411_s27 }
  0x46   : > { %p2126_p12 = scmp.lt.s32.totalorder %s2573_s18, 2  ;;  %p59_p0 = scmp.eq.s32.totalorder %s58_s20, 0 }
  0x47   : > { %s3362_s28 = scalar_select %p2770_p10, 1, 0 }
  0x48   : > { %s3320_s13 = sand.u32 1, %s2561_s15   ;;  %s2783_s14 = sshll.u32 %s2569_s17, 7 }
  0x49   : > { %3363 = sst [smem:[#allocation34_spill]] %s3362_s28  ;;  %s2780_s25 = sshll.u32 %s3320_s13, 3 }
  0x4a   : > { %s2786_s29 = scalar_select %p59_p0, %s2561_s15, %s61_s22  }
  0x4b   : > { %p2788_p3 = pnand %p2126_p12, %p70_p6  ;;  %s498_s10 = sand.u32 1, %s2573_s18  }
  0x4c   : > { %3364 = sst [smem:[#allocation35_spill]] %s2786_s29  ;;  %s3366_s1 = sld [smem:[#allocation36_spill]] }
  0x4d   : > { %s3365_s11 = scalar_select %p2788_p3, 1, 0 }
  0x4e   : > { %s502_s13 = scalar_lea.vmem [#allocation7], %s2780_s25  ;;  %s2578_s22 = smov [#allocation12]  }
  0x4f   : > { %s509_s17 = sshll.u32 %s502_s13, 4  ;;  %s2802_s29 = sshll.u32 %s2578_s22, 4  ;;  %s2800_s17 = int_to_ptr.vmem [resolvable:$true] %s509_s17  ;;  %s450_s29 = int_to_ptr.vmem [resolvable:$true] %s2802_s29 }
  0x50   : > { %s2804_s12 = scalar_lea.sflag [#allocation8], %s498_s10  ;;  %p2810_p7 = pneg %p2788_p3 }
  0x52   : > { %s2797_s20 = scalar_lea.hbm %s3366_s1, %s2783_s14  ;;  %s2246_s18 = scalar_lea.hbm %s3366_s1, 256 }
  0x53   : > { %s2241_s28 = scalar_lea.hbm %s2797_s20, 128  ;;  %p2247_p2 = scmp.lt.u32.totalorder %s2797_s20, %s3366_s1 }
  0x54   : > { %p2242_p5 = scmp.ne.s32.totalorder %s2797_s20, %s2241_s28  ;;  %p2248_p4 = scmp.lt.u32.totalorder %s2246_s18, %s2241_s28 }
  0x55   : > { %s3367_s3 = scalar_select %p2810_p7, 1, 0 }
  0x56   : > { %p2244_p9 = pnand %p2810_p7, %p2242_p5  ;;  %p2249_p6 = por %p2248_p4, %p2247_p2 }
  0x57   : > { %p2250_p8 = scmp.lt.u32.totalorder %s2241_s28, %s2797_s20 }
  0x58   : > { %p2245_p1 = pneg %p2244_p9 }
  0x59   : > { %p2251_p12 = por %p2250_p8, %p2249_p6 }
  0x5b   : > { %p2252_p0 = pnand %p2251_p12, %p2245_p1 }
  0x5d   : > { %2255 = shalt.err (!%p2252_p0)
}
  0x5e   : > { %s2256_s10 = scalar_lea.vmem %s2800_s17, 128  ;;  %s2579_s27 = smov [#allocation7]  }
  0x5f   : > { %p2257_p5 = scmp.ne.s32.totalorder %s2800_s17, %s2256_s10  ;;  %s2261_s13 = sshll.u32 %s2579_s27, 4  ;;  %s2262_s13 = int_to_ptr.vmem [resolvable:$false] %s2261_s13 }
  0x60   : > { %s2263_s16 = scalar_lea.vmem %s2262_s13, 256  ;;  %p2264_p11 = scmp.lt.s32.totalorder %s2800_s17, %s2262_s13 }
  0x61   : > { %p2259_p9 = pnand %p2257_p5, %p2810_p7  ;;  %p2265_p13 = scmp.lt.s32.totalorder %s2263_s16, %s2256_s10 }
  0x63   : > { %p2260_p10 = pneg %p2259_p9  ;;  %p2266_p2 = por %p2265_p13, %p2264_p11 }
  0x65   : > { %p2267_p4 = pnand %p2266_p2, %p2260_p10 }
  0x67   : > { %2270 = shalt.err (!%p2267_p4)
}
  0x68   : > { %2106 = dma.hbm_to_vmem [thread:$0]  (!%p2788_p3), %s2797_s20, 128, %s2800_s17, %s2804_s12  }
  0x69   : > { %s2271_s22 = scalar_lea.hbm %s3300_s7, 256  ;;  %p3368_p11 = scmp.ne.s32.totalorder %s3359_s24, 0 }
  0x6a   : > { %p2272_p1 = scmp.ne.s32.totalorder %s3300_s7, %s2271_s22  ;;  %p2278_p6 = scmp.lt.u32.totalorder %s2271_s22, %s3300_s7 }
  0x6c   : > { %p2274_p13 = pnand %p2272_p1, %p3368_p11 }
  0x6e   : > { %p2275_p10 = pneg %p2274_p13 }
  0x70   : > { %p2280_p8 = pnand %p2278_p6, %p2275_p10 }
  0x72   : > { %2283 = shalt.err (!%p2280_p8)
}
  0x73   : > { %s2284_s16 = scalar_lea.vmem %s450_s29, 256  ;;  %p2292_p9 = scmp.lt.s32.totalorder %s450_s29, %s450_s29 }
  0x74   : > { %p2285_p12 = scmp.ne.s32.totalorder %s450_s29, %s2284_s16  ;;  %p2293_p2 = scmp.lt.s32.totalorder %s2284_s16, %s2284_s16 }
  0x76   : > { %p2287_p0 = pnand %p2285_p12, %p3368_p11  ;;  %p2294_p4 = por %p2293_p2, %p2292_p9 }
  0x78   : > { %p2288_p5 = pneg %p2287_p0 }
  0x7a   : > { %p2295_p3 = pnand %p2294_p4, %p2288_p5 }
  0x7c   : > { %2298 = shalt.err (!%p2295_p3)
}
  0x7d   : > { %p3369_p1 = scmp.ne.s32.totalorder %s3357_s26, 0  ;;  %s3370_s1 = smov 4  }
  0x7e   : > { %s3371_s17 = smov 64   ;;  %s2580_s28 = smov [#allocation13]  }
  0x7f   : > { %2096 = dma.hbm_to_vmem [thread:$0]  (!%p3369_p1), %s3300_s7, 256, %s450_s29, [#allocation11], %s3371_s17, %s3371_s17, %s3370_s1  }
  0x80   : > { %s463_s22 = sshll.u32 %s2580_s28, 4  ;;  %s2299_s13 = scalar_lea.hbm %s3301_s8, 16  ;;  %s464_s22 = int_to_ptr.vmem [resolvable:$true] %s463_s22 }
  0x81   : > { %p2300_p3 = scmp.ne.s32.totalorder %s3301_s8, %s2299_s13  ;;  %p2306_p6 = scmp.lt.u32.totalorder %s2299_s13, %s3301_s8 }
  0x83   : > { %p2302_p13 = pnand %p2300_p3, %p3368_p11 }
  0x85   : > { %p2303_p10 = pneg %p2302_p13 }
  0x87   : > { %p2308_p8 = pnand %p2306_p6, %p2303_p10 }
  0x89   : > { %2311 = shalt.err (!%p2308_p8)
}
  0x8a   : > { %s2312_s29 = scalar_lea.vmem %s464_s22, 16  ;;  %s2319_s1 = scalar_lea.vmem %s464_s22, 32 }
  0x8b   : > { %p2313_p12 = scmp.ne.s32.totalorder %s464_s22, %s2312_s29  ;;  %p2320_p9 = scmp.lt.s32.totalorder %s464_s22, %s464_s22 }
  0x8c   : > { %p2321_p2 = scmp.lt.s32.totalorder %s2319_s1, %s2312_s29 }
  0x8d   : > { %p2315_p0 = pnand %p2313_p12, %p3368_p11 }
  0x8e   : > { %p2322_p4 = por %p2321_p2, %p2320_p9 }
  0x8f   : > { %p2316_p5 = pneg %p2315_p0 }
  0x91   : > { %p2323_p7 = pnand %p2322_p4, %p2316_p5 }
  0x93   : > { %2326 = shalt.err (!%p2323_p7)
}
  0x94   : > { %2099 = dma.hbm_to_vmem [thread:$0]  (!%p3369_p1), %s3301_s8, 16, %s464_s22, [#allocation14]  }
  0x95   : > { %s2878_s24 = scalar_lea.hbm %s3293_s0, %s2783_s14  ;;  %s484_s20 = scalar_lea.vmem [#allocation4], %s2780_s25 }
  0x96   : > { %s491_s18 = sshll.u32 %s484_s20, 4  ;;  %s3372_s26 = sand.u32 1, %s2561_s15   ;;  %s492_s18 = int_to_ptr.vmem [resolvable:$true] %s491_s18 }
  0x97   : > { %s481_s28 = scalar_lea.sflag [#allocation5], %s3372_s26  ;;  %s2327_s27 = scalar_lea.hbm %s2878_s24, 128 }
  0x98   : > { %p2328_p7 = scmp.ne.s32.totalorder %s2878_s24, %s2327_s27  ;;  %p3373_p11 = scmp.ne.s32.totalorder %s3367_s3, 0 }
  0x99   : > { %s2332_s13 = scalar_lea.hbm %s3293_s0, 256  ;;  %p2333_p1 = scmp.lt.u32.totalorder %s2878_s24, %s3293_s0 }
  0x9a   : > { %p2330_p3 = pnand %p2328_p7, %p3373_p11  ;;  %p2334_p10 = scmp.lt.u32.totalorder %s2332_s13, %s2327_s27 }
  0x9b   : > { %p2336_p8 = scmp.lt.u32.totalorder %s2327_s27, %s2878_s24 }
  0x9c   : > { %p2331_p13 = pneg %p2330_p3  ;;  %p2335_p6 = por %p2334_p10, %p2333_p1 }
  0x9e   : > { %p2337_p12 = por %p2336_p8, %p2335_p6 }
  0xa0   : > { %p2338_p0 = pnand %p2337_p12, %p2331_p13 }
  0xa2   : > { %2341 = shalt.err (!%p2338_p0)
}
  0xa3   : > { %s2342_s1 = scalar_lea.vmem %s492_s18, 128  ;;  %s2581_s9 = smov [#allocation4]  }
  0xa4   : > { %p2343_p5 = scmp.ne.s32.totalorder %s492_s18, %s2342_s1  ;;  %s2347_s17 = sshll.u32 %s2581_s9, 4  ;;  %s2348_s17 = int_to_ptr.vmem [resolvable:$false] %s2347_s17 }
  0xa5   : > { %s2349_s4 = scalar_lea.vmem %s2348_s17, 256  ;;  %p2350_p4 = scmp.lt.s32.totalorder %s492_s18, %s2348_s17 }
  0xa6   : > { %p2345_p9 = pnand %p2343_p5, %p3373_p11  ;;  %p2351_p7 = scmp.lt.s32.totalorder %s2349_s4, %s2342_s1 }
  0xa8   : > { %p2346_p2 = pneg %p2345_p9  ;;  %p2352_p3 = por %p2351_p7, %p2350_p4 }
  0xaa   : > { %p2353_p1 = pnand %p2352_p3, %p2346_p2 }
  0xac   : > { %2356 = shalt.err (!%p2353_p1)
}
  0xad   : > { %p3374_p10 = scmp.ne.s32.totalorder %s3365_s11, 0  ;;  %s2904_s26 = scalar_lea.hbm %s3295_s2, %s2783_s14 }
  0xae   : > { %s520_s27 = scalar_lea.vmem [#allocation9], %s2780_s25  ;;  %s2357_s10 = scalar_lea.hbm %s2904_s26, 128 }
  0xaf   : > { %2103 = dma.hbm_to_vmem [thread:$0]  (!%p3374_p10), %s2878_s24, 128, %s492_s18, %s481_s28  }
  0xb0   : > { %s528_s22 = sshll.u32 %s520_s27, 4  ;;  %p2358_p13 = scmp.ne.s32.totalorder %s2904_s26, %s2357_s10  ;;  %s529_s22 = int_to_ptr.vmem [resolvable:$true] %s528_s22 }
  0xb1   : > { %s2362_s24 = scalar_lea.hbm %s3295_s2, 256  ;;  %p2363_p12 = scmp.lt.u32.totalorder %s2904_s26, %s3295_s2 }
  0xb2   : > { %p2360_p6 = pnand %p2358_p13, %p3373_p11  ;;  %p2364_p0 = scmp.lt.u32.totalorder %s2362_s24, %s2357_s10 }
  0xb3   : > { %p2366_p9 = scmp.lt.u32.totalorder %s2357_s10, %s2904_s26 }
  0xb4   : > { %p2361_p8 = pneg %p2360_p6  ;;  %p2365_p5 = por %p2364_p0, %p2363_p12 }
  0xb6   : > { %p2367_p2 = por %p2366_p9, %p2365_p5 }
  0xb8   : > { %p2368_p4 = pnand %p2367_p2, %p2361_p8 }
  0xba   : > { %2371 = shalt.err (!%p2368_p4)
}
  0xbb   : > { %s2372_s25 = scalar_lea.vmem %s529_s22, 128  ;;  %s2582_s14 = smov [#allocation9]  }
  0xbc   : > { %p2373_p7 = scmp.ne.s32.totalorder %s529_s22, %s2372_s25  ;;  %s2377_s29 = sshll.u32 %s2582_s14, 4  ;;  %s2378_s29 = int_to_ptr.vmem [resolvable:$false] %s2377_s29 }
  0xbd   : > { %s2379_s1 = scalar_lea.vmem %s2378_s29, 256  ;;  %p2380_p13 = scmp.lt.s32.totalorder %s529_s22, %s2378_s29 }
  0xbe   : > { %p2375_p3 = pnand %p2373_p7, %p3373_p11  ;;  %p2381_p6 = scmp.lt.s32.totalorder %s2379_s1, %s2372_s25 }
  0xc0   : > { %p2376_p1 = pneg %p2375_p3  ;;  %p2382_p10 = por %p2381_p6, %p2380_p13 }
  0xc2   : > { %p2383_p0 = pnand %p2382_p10, %p2376_p1 }
  0xc4   : > { %2386 = shalt.err (!%p2383_p0)
}
  0xc5   : > { %p3375_p12 = scmp.ne.s32.totalorder %s3365_s11, 0  ;;  %p3376_p8 = scmp.ne.s32.totalorder %s3356_s23, 0 }
  0xc6   : > { %s2928_s3 = sand.u32 (!%p3376_p8), 1, %s2557_s30   ;;  %p3377_p11 = scmp.ne.s32.totalorder (!%p3376_p8), %s3353_s21, 0 }
  0xc7   : > { %2109 = dma.hbm_to_vmem [thread:$0]  (!%p3375_p12), %s2904_s26, 128, %s529_s22, %s2804_s12  }
  0xc8   : > { %537 = sbr.rel (%p3376_p8) target bundleno = 1561 (0x619), region = 64  ;;  %s2931_s9 = sshll.u32 (!%p3376_p8), %s2928_s3, 3 }
  0xc9   : > { %s540_s17 = scalar_lea.sflag (!%p3376_p8), [#allocation5], %s2928_s3  ;;  %s543_s4 = scalar_lea.vmem (!%p3376_p8), [#allocation4], %s2931_s9 }
  0xcf   : > { %2524 = dma.done.wait (%p3377_p11), %s540_s17, 128  }
  0xd0   : > { %2526 = vsyncadd (%p3377_p11), %s540_s17, 4294967168  ;;  %s548_s12 = sand.u32 1, %s2700_s19   ;;  %s552_s11 = scalar_lea.vmem [#allocation7], %s2931_s9 }
  0xd1   : > { %s549_s23 = scalar_lea.sflag [#allocation8], %s548_s12 }
  0xd2   : > { %2528 = dma.done.wait (%p3377_p11), %s549_s23, 256  }
  0xd3   : > { %2530 = vsyncadd (%p3377_p11), %s549_s23, 4294967040  ;;  %s561_s6 = scalar_lea.vmem [#allocation9], %s2931_s9  ;;  %p3378_p10 = scmp.eq.s32.totalorder %s2700_s19, 0 }
  0xd5   : > { %2532 = dma.done.wait (%p3378_p10), [#allocation11], 512   ;;  %p3379_p5 = pmov %p3378_p10 }
  0xd7   : > { %2534 = vsyncadd (%p3379_p5), [#allocation11], 4294966784  ;;  %p3380_p9 = pmov %p3379_p5 }
  0xd8   : > { %p3381_p2 = pmov %p3379_p5 }
  0xd9   : > { %2536 = dma.done.wait (%p3380_p9), [#allocation14], 16  }
  0xda   : > { %2538 = vsyncadd (%p3381_p2), [#allocation14], 4294967280  ;;  %v2583_v0 = vmov 0.0   ;;  %vm2584_vm0 = vmmov 0   ;;  %v2191_v1 = vld [vmem:[#allocation10] sm:$0xff]   ;;  %v2192_v2 = vld [vmem:[#allocation10 + $0x8] sm:$0xff]  }
  0xdb   : > { %1968 = vmatprep.subr.bf16.mxu0 %v2583_v0  ;;  %1972 = vmatprep.mubr.msk.bf16.mxu0 %vm2584_vm0, %v2583_v0  ;;  %v648_v3 = vld [vmem:[%s543_s4] sm:$0xff]  ;;  %vm675_vm1 = vcmask 261120   ;;  %v650_v11 = vld [vmem:[%s552_s11] sm:$0xff]  ;;  %s1894_s22 = sshll.u32 %s2928_s3, 5  ;;  %s3382_s16 = sld [smem:[#allocation38_spill]]  ;;  %vm805_vm2 = vcmask 64512  }
  0xdc   : > { %1976 = vmatprep.subr.bf16.mxu1 %v2583_v0  ;;  %1980 = vmatprep.mubr.msk.bf16.mxu1 %vm2584_vm0, %v2583_v0  ;;  %v649_v4 = vpack.c.bf16 %v648_v3, %v648_v3  ;;  %v2193_v5 = vld [vmem:[#allocation12] sm:$0xff]   ;;  %v2194_v6 = vld [vmem:[#allocation12 + $0x8] sm:$0xff]   ;;  %v651_v12 = vpack.c.bf16 %v650_v11, %v650_v11  ;;  %vm818_vm3 = vcmask 60416   ;;  %s2585_s24 = smov 104   ;;  %s2586_s18 = smov 120   ;;  %vm1160_vm4 = vcmask 1043456  }
  0xdd   : > { %1969 = vmatpush3.bf16.msra.mxu0 %v2191_v1  ;;  %v831_v7 = vld [vmem:[%s561_s6] sm:$0xff]  ;;  %s2993_s28 = scalar_lea.vmem [#allocation18], %s1894_s22  ;;  %v1904_v20 = vld [vmem:[#allocation13] ss:$0 sm:$0xff]  ;;  %s2587_s25 = smov 112  }
  0xde   : > { %1970 = vmatprep.subr.bf16.mxu0 %v2583_v0  ;;  %v832_v8 = vpack.c.bf16 %v831_v7, %v831_v7  ;;  %v2195_v9 = vld [vmem:[%s3298_s5] sm:$0xff]   ;;  %v2196_v10 = vld [vmem:[%s3298_s5 + $0x8] sm:$0xff]   ;;  %s3383_s1 = sld [smem:[#allocation39_spill]]  ;;  %s3041_s17 = scalar_lea.vmem [#allocation19], %s1894_s22 }
  0xdf   : > { %1977 = vmatpush3.bf16.msra.mxu1 %v2195_v9  ;;  %s628_s4 = scalar_lea.vmem [#allocation16], %s2931_s9  ;;  %s3384_s6 = sld [smem:[#allocation40_spill]] }
  0xe0   : > { %1978 = vmatprep.subr.bf16.mxu1 %v2583_v0  ;;  %s3385_s13 = sld [smem:[#allocation29_spill]]  ;;  %s3387_s29 = sld [smem:[#allocation43_spill]] }
  0xe1   : > { %1971 = vmatpush3.bf16.msra.mxu0 %v2192_v2  ;;  %v1896_v13 = vld [vmem:[%s3382_s16] ss:$0 sm:$0xff]  ;;  %s3386_s16 = sld [smem:[#allocation34_spill]]  ;;  %s1594_s11 = sshll.u32 %s628_s4, 4  ;;  %s1595_s11 = int_to_ptr.vmem [resolvable:$true] %s1594_s11 }
  0xe2   : > { %1984 = vmatprep.subr.bf16.mxu0 %v2583_v0  ;;  %s1623_s21 = sshll.u32 %s3041_s17, 4  ;;  %s3133_s20 = scalar_lea.sflag [#allocation17], %s548_s12  ;;  %s3160_s21 = int_to_ptr.vmem [resolvable:$true] %s1623_s21 }
  0xe3   : > { %1979 = vmatpush3.bf16.msra.mxu1 %v2196_v10  ;;  %s2387_s26 = scalar_lea.vmem %s1595_s11, 128  ;;  %s2588_s27 = smov [#allocation16]  }
  0xe4   : > { %1973 = vmatmul.mubr.msk.bf16.vlgmr.msra.gmra.mrb[0].mxu0 %vm675_vm1, %v649_v4  ;;  %1992 = vmatprep.subr.bf16.mxu1 %v2583_v0  ;;  %v1900_v30 = vld [vmem:[%s3383_s1] ss:$0 sm:$0xff]  ;;  %p2388_p4 = scmp.ne.s32.totalorder %s1595_s11, %s2387_s26  ;;  %s2391_s22 = sshll.u32 %s2588_s27, 4  ;;  %s2392_s22 = int_to_ptr.vmem [resolvable:$false] %s2391_s22 }
  0xe5   : > { %1985 = vmatpush3.bf16.msra.mxu0 %v2193_v5  ;;  %1988 = vmatprep.mubr.msk.bf16.mxu0 %vm2584_vm0, %v2583_v0  ;;  %s2393_s10 = scalar_lea.vmem %s2392_s22, 256  ;;  %p2394_p13 = scmp.lt.s32.totalorder %s1595_s11, %s2392_s22 }
  0xe6   : > { %1986 = vmatprep.subr.bf16.mxu0 %v2583_v0  ;;  %1981 = vmatmul.mubr.msk.bf16.vlgmr.msra.gmra.mrb[0].mxu1 %vm675_vm1, %v651_v12  ;;  %s3388_s1 = smov %s3387_s29  ;;  %p2395_p6 = scmp.lt.s32.totalorder %s2393_s10, %s2387_s26 }
  0xe7   : > { %1994 = vmatprep.mubr.msk.bf16.mxu1 %vm2584_vm0, %v2583_v0  ;;  %p3389_p7 = scmp.ne.s32.totalorder %s3386_s16, 0 }
  0xe8   : > { %p2396_p0 = por %p2395_p6, %p2394_p13 }
  0xe9   : > { %1987 = vmatpush3.bf16.msra.mxu0 %v2194_v6  ;;  %p2389_p3 = pnand %p2388_p4, %p3389_p7 }
  0xea   : > { %1998 = vmatprep.subr.bf16.mxu0 %v2583_v0 }
  0xeb   : > { %p2390_p1 = pneg %p2389_p3 }
  0xec   : > { %1989 = vmatmul.mubr.msk.bf16.vlgmr.msra.gmra.mrb[4].mxu0 %vm675_vm1, %v832_v8 }
  0xed   : > { %2000 = vmatprep.mubr.msk.bf16.mxu0 %vm2584_vm0, %v2583_v0  ;;  %p2397_p12 = pnand %p2396_p0, %p2390_p1 }
 0x1b7   : > { %v713_v14 = vpop.f32.mrb[0].mxu0 }
 0x1b8   : > { %v714_v15 = vadd.f32 %v1896_v13, %v713_v14  ;;  %v1974_v16 = vpop.f32.mrb[1].mxu0 }
 0x1b9   : > { %v716_v17 = vpop.f32.mrb[2].mxu0  ;;  %v779_v31 = vpop.f32.mrb[0].mxu1 }
 0x1ba   : > { %v814_v18 = vpack.c.bf16 %v714_v15, %v714_v15  ;;  %792 = vrot.lane.b32.xlu1 %v714_v15, %s2585_s24  ;;  %786 = vrot.lane.b32.xlu0 %v714_v15, %s2586_s18  ;;  %v1975_v19 = vpop.f32.mrb[3].mxu0  ;;  %806 = vst.msk [vmem:[%s2993_s28] sm:$0xff] %vm805_vm2, %v714_v15  ;;  %v3010_v32 = vadd.f32 %v1900_v30, %v779_v31  ;;  %v1982_v33 = vpop.f32.mrb[1].mxu1 }
 0x1bb   : > { %v782_v34 = vpop.f32.mrb[2].mxu1 }
 0x1bc   : > { %819 = vst.msk [vmem:[#allocation2] sm:$0xf] %vm818_vm3, %v814_v18  ;;  %v823_v35 = vpack.c.bf16 %v3010_v32, %v3010_v32  ;;  %v1983_v36 = vpop.f32.mrb[3].mxu1 }
 0x1bd   : > { %810 = vst.msk [vmem:[%s3041_s17] sm:$0xff] %vm805_vm2, %v3010_v32 }
 0x1be   : > { %789 = vrot.lane.b32.xlu0 %v714_v15, %s2587_s25  ;;  %827 = vst.msk [vmem:[#allocation3] sm:$0xf] %vm818_vm3, %v823_v35 }
 0x1bf   : > { %v894_v21 = vpop.f32.mrb[4].mxu0 }
 0x1c0   : > { %v895_v22 = vadd.f32 %v1904_v20, %v894_v21  ;;  %v1990_v23 = vpop.f32.mrb[5].mxu0 }
 0x1c1   : > { %v897_v24 = vpop.f32.mrb[6].mxu0 }
 0x1c2   : > { %v900_v25 = vmul.f32 0.35355338, %v895_v22  ;;  %v1991_v26 = vpop.f32.mrb[7].mxu0 }
 0x1c3   : > { %v915_v27 = vld [vmem:[#allocation2] sm:$0xf] }
 0x1c4   : > { %v924_v28 = vsel %vm805_vm2, %v915_v27, 0  ;;  %902 = vrot.lane.b32.xlu1 %v900_v25, %s2586_s18  ;;  %905 = vrot.lane.b32.xlu0 %v900_v25, %s2587_s25  ;;  %v911_v29 = vpack.c.bf16 %v900_v25, %v900_v25 }
 0x1c5   : > { %1993 = vmatpush3.bf16.xpose.msra.mxu1 %v924_v28  ;;  %v1153_v55 = vld [vmem:[#allocation3] sm:$0xf] }
 0x1c6   : > { %2004 = vmatprep.subr.bf16.mxu1 %v2583_v0  ;;  %v1162_v56 = vsel %vm1160_vm4, %v1153_v55, 0 }
 0x1c8   : > { %908 = vrot.lane.b32.xlu1 %v900_v25, %s2585_s24 }
 0x1cc   : > { %1995 = vmatmul.mubr.msk.bf16.vlgmr.msra.gmra.mrb[4].mxu1 %vm805_vm2, %v911_v29 }
 0x1cd   : > { %2006 = vmatprep.mubr.msk.bf16.mxu1 %vm2584_vm0, %v2583_v0 }
 0x22c   : > { %v793_v37 = vpop.permute.xlu1 %792  ;;  %v787_v38 = vpop.permute.xlu0 %786 }
 0x22d   : > { %809 = vst.msk [vmem:[%s2993_s28 + $0x18] sm:$0xff] %vm805_vm2, %v793_v37  ;;  %v817_v39 = vpack.c.bf16 %v793_v37, %v793_v37  ;;  %807 = vst.msk [vmem:[%s2993_s28 + $0x8] sm:$0xff] %vm805_vm2, %v787_v38  ;;  %v815_v40 = vpack.c.bf16 %v787_v38, %v787_v38 }
 0x22f   : > { %822 = vst.msk [vmem:[#allocation2 + $0xc] sm:$0xf] %vm818_vm3, %v817_v39  ;;  %820 = vst.msk [vmem:[#allocation2 + $0x4] sm:$0xf] %vm818_vm3, %v815_v40 }
 0x230   : > { %v790_v41 = vpop.permute.xlu0 %789 }
 0x231   : > { %808 = vst.msk [vmem:[%s2993_s28 + $0x10] sm:$0xff] %vm805_vm2, %v790_v41  ;;  %v816_v42 = vpack.c.bf16 %v790_v41, %v790_v41 }
 0x233   : > { %821 = vst.msk [vmem:[#allocation2 + $0x8] sm:$0xf] %vm818_vm3, %v816_v42 }
 0x236   : > { %v916_v43 = vld [vmem:[#allocation2 + $0x4] sm:$0xf]  ;;  %v903_v45 = vpop.permute.xlu1 %902  ;;  %v918_v49 = vld [vmem:[#allocation2 + $0xc] sm:$0xf]  ;;  %v906_v50 = vpop.permute.xlu0 %905 }
 0x237   : > { %v970_v44 = vsel %vm805_vm2, %v916_v43, 0  ;;  %v912_v47 = vpack.c.bf16 %v903_v45, %v903_v45  ;;  %v1062_v51 = vsel %vm805_vm2, %v918_v49, 0  ;;  %v913_v52 = vpack.c.bf16 %v906_v50, %v906_v50 }
 0x238   : > { %1999 = vmatpush3.bf16.xpose.msra.mxu0 %v970_v44 }
 0x239   : > { %2010 = vmatprep.subr.bf16.mxu0 %v2583_v0 }
 0x23a   : > { %v917_v46 = vld [vmem:[#allocation2 + $0x8] sm:$0xf]  ;;  %v909_v53 = vpop.permute.xlu1 %908 }
 0x23b   : > { %v1016_v48 = vsel %vm805_vm2, %v917_v46, 0  ;;  %v914_v54 = vpack.c.bf16 %v909_v53, %v909_v53 }
 0x23c   : > { %2005 = vmatpush3.bf16.xpose.msra.mxu1 %v1016_v48 }
 0x23d   : > { %2016 = vmatprep.subr.bf16.mxu1 %v2583_v0 }
 0x23f   : > { %2001 = vmatmul.mubr.msk.bf16.vlgmr.msra.gmra.mrb[8].mxu0 %vm805_vm2, %v912_v47 }
 0x240   : > { %2011 = vmatpush3.bf16.xpose.msra.mxu0 %v1062_v51  ;;  %2012 = vmatprep.mubr.msk.bf16.mxu0 %vm2584_vm0, %v2583_v0 }
 0x241   : > { %2022 = vmatprep.subr.bf16.mxu0 %v2583_v0 }
 0x243   : > { %2007 = vmatmul.mubr.msk.bf16.vlgmr.msra.gmra.mrb[8].mxu1 %vm805_vm2, %v913_v52 }
 0x244   : > { %2018 = vmatprep.mubr.msk.bf16.mxu1 %vm2584_vm0, %v2583_v0  ;;  %2017 = vmatpush3.bf16.msra.mxu1 %v1162_v56 }
 0x245   : > { %2028 = vmatprep.subr.bf16.mxu1 %v2583_v0 }
 0x247   : > { %2013 = vmatmul.mubr.msk.bf16.vlgmr.msra.gmra.mrb[12].mxu0 %vm805_vm2, %v914_v54 }
 0x248   : > { %2024 = vmatprep.mubr.msk.bf16.mxu0 %vm2584_vm0, %v2583_v0 }
 0x29f   : > { %v960_v57 = vpop.f32.mrb[4].mxu1 }
 0x2a0   : > { %v1996_v58 = vpop.f32.mrb[5].mxu1  ;;  %v1104_v59 = vsel %vm805_vm2, %v960_v57, -inf }
 0x2a1   : > { %1105 = vmax.xlane.f32.xlu0 %v1104_v59  ;;  %v963_v60 = vpop.f32.mrb[6].mxu1 }
 0x2a2   : > { %v1997_v61 = vpop.f32.mrb[7].mxu1  ;;  %v1346_v60 = vld [vmem:[%s3384_s6] sm:$0xf] }
 0x312   : > { %v1006_v62 = vpop.f32.mrb[8].mxu0 }
 0x313   : > { %v2002_v63 = vpop.f32.mrb[9].mxu0  ;;  %v1107_v1 = vsel %vm805_vm2, %v1006_v62, -inf }
 0x314   : > { %1108 = vmax.xlane.f32.xlu1 %v1107_v1  ;;  %v1009_v2 = vpop.f32.mrb[10].mxu0  ;;  %v1354_v63 = vsel %vm1160_vm4, %v1346_v60, 0  ;;  %v1347_v1 = vld [vmem:[%s3384_s6 + $0x4] sm:$0xf] }
 0x315   : > { %v2003_v3 = vpop.f32.mrb[11].mxu0  ;;  %v1400_v2 = vsel %vm1160_vm4, %v1347_v1, 0 }
 0x316   : > { %v1052_v4 = vpop.f32.mrb[8].mxu1  ;;  %v1348_v3 = vld [vmem:[%s3384_s6 + $0x8] sm:$0xf] }
 0x317   : > { %v2008_v5 = vpop.f32.mrb[9].mxu1  ;;  %v1110_v6 = vsel %vm805_vm2, %v1052_v4, -inf }
 0x318   : > { %1111 = vmax.xlane.f32.xlu0 %v1110_v6  ;;  %v1055_v7 = vpop.f32.mrb[10].mxu1 }
 0x319   : > { %v2009_v8 = vpop.f32.mrb[11].mxu1  ;;  %v1446_v7 = vsel %vm1160_vm4, %v1348_v3, 0 }
 0x31a   : > { %v1098_v9 = vpop.f32.mrb[12].mxu0 }
 0x31b   : > { %v2014_v10 = vpop.f32.mrb[13].mxu0  ;;  %v1113_v11 = vsel %vm805_vm2, %v1098_v9, -inf }
 0x31c   : > { %1114 = vmax.xlane.f32.xlu0 %v1113_v11  ;;  %v1101_v12 = vpop.f32.mrb[14].mxu0  ;;  %v1349_v10 = vld [vmem:[%s3384_s6 + $0xc] sm:$0xf] }
 0x31d   : > { %v2015_v13 = vpop.f32.mrb[15].mxu0 }
 0x325   : > { %796 = vrot.lane.b32.xlu1 %v3010_v32, %s2586_s18  ;;  %s3338_s18 = sshll.u32 %s3385_s13, 7 }
 0x326   : > { %s3126_s23 = scalar_lea.hbm %s3387_s29, %s3338_s18 }
 0x32e   : > { %v1106_v14 = vpop.xlane.xlu0 %1105 }
 0x32f   : > { %v1116_v15 = vsub.f32 %v960_v57, %v1106_v14  ;;  %v1492_v14 = vsel %vm1160_vm4, %v1349_v10, 0 }
 0x331   : > { %v1120_v16 = vmul.f32 1.442695, %v1116_v15 }
 0x333   : > { %2197 = vpow2.f32 %v1120_v16 }
 0x33d   : > { %v2198_v17 = vpop.eup %2197 }
 0x33e   : > { %v1128_v18 = vsel %vm805_vm2, %v2198_v17, 0.0 }
 0x349   : > { %1129 = vadd.xlane.f32.xlu1 %v1128_v18 }
 0x3a1   : > { %v1109_v19 = vpop.xlane.xlu1 %1108 }
 0x3a2   : > { %v1117_v20 = vsub.f32 %v1006_v62, %v1109_v19 }
 0x3a4   : > { %v1122_v21 = vmul.f32 1.442695, %v1117_v20 }
 0x3a5   : > { %v1112_v22 = vpop.xlane.xlu0 %1111  ;;  %v797_v23 = vpop.permute.xlu1 %796 }
 0x3a6   : > { %2199 = vpow2.f32 %v1122_v21  ;;  %v1118_v24 = vsub.f32 %v1052_v4, %v1112_v22  ;;  %811 = vst.msk [vmem:[%s3041_s17 + $0x8] sm:$0xff] %vm805_vm2, %v797_v23  ;;  %v824_v25 = vpack.c.bf16 %v797_v23, %v797_v23 }
 0x3a8   : > { %v1124_v26 = vmul.f32 1.442695, %v1118_v24  ;;  %828 = vst.msk [vmem:[#allocation3 + $0x4] sm:$0xf] %vm818_vm3, %v824_v25 }
 0x3a9   : > { %v1115_v27 = vpop.xlane.xlu0 %1114 }
 0x3aa   : > { %2201 = vpow2.f32 %v1124_v26  ;;  %v1119_v28 = vsub.f32 %v1098_v9, %v1115_v27 }
 0x3ac   : > { %v1126_v29 = vmul.f32 1.442695, %v1119_v28 }
 0x3ae   : > { %2203 = vpow2.f32 %v1126_v29 }
 0x3af   : > { %v1154_v30 = vld [vmem:[#allocation3 + $0x4] sm:$0xf] }
 0x3b0   : > { %v2200_v31 = vpop.eup %2199  ;;  %v1208_v33 = vsel %vm1160_vm4, %v1154_v30, 0 }
 0x3b1   : > { %2023 = vmatpush3.bf16.msra.mxu0 %v1208_v33  ;;  %v1131_v34 = vsel %vm805_vm2, %v2200_v31, 0.0 }
 0x3b2   : > { %1132 = vadd.xlane.f32.xlu0 %v1131_v34  ;;  %2034 = vmatprep.subr.bf16.mxu0 %v2583_v0 }
 0x3b4   : > { %v2202_v35 = vpop.eup %2201 }
 0x3b5   : > { %v1134_v36 = vsel %vm805_vm2, %v2202_v35, 0.0 }
 0x3b6   : > { %1135 = vadd.xlane.f32.xlu1 %v1134_v36 }
 0x3b8   : > { %v2204_v37 = vpop.eup %2203 }
 0x3b9   : > { %v1137_v38 = vsel %vm805_vm2, %v2204_v37, 0.0 }
 0x3ba   : > { %1138 = vadd.xlane.f32.xlu0 %v1137_v38 }
 0x3c7   : > { %802 = vrot.lane.b32.xlu1 %v3010_v32, %s2585_s24  ;;  %s1607_s24 = sshll.u32 %s2993_s28, 4  ;;  %s3155_s24 = int_to_ptr.vmem [resolvable:$true] %s1607_s24 }
 0x3d0   : > { %799 = vrot.lane.b32.xlu0 %v3010_v32, %s2587_s25 }
 0x3d6   : > { %v1130_v39 = vpop.xlane.xlu1 %1129 }
 0x3d7   : > { %2205 = vrcp.f32 %v1130_v39 }
 0x3e1   : > { %v2206_v40 = vpop.eup %2205 }
 0x3e2   : > { %v1144_v41 = vmul.f32 %v2206_v40, %v2198_v17 }
 0x3e4   : > { %v1149_v42 = vpack.c.bf16 %v1144_v41, %v1144_v41  ;;  %1148 = vst.msk [vmem:[%s628_s4] sm:$0xff] %vm805_vm2, %v1144_v41 }
 0x3e6   : > { %2019 = vmatmul.mubr.msk.bf16.vlgmr.msra.gmra.mrb[12].mxu1 %vm805_vm2, %v1149_v42 }
 0x3e7   : > { %2030 = vmatprep.mubr.msk.bf16.mxu1 %vm2584_vm0, %v2583_v0 }
 0x43f   : > { %v1133_v43 = vpop.xlane.xlu0 %1132 }
 0x440   : > { %2207 = vrcp.f32 %v1133_v43 }
 0x443   : > { %v1136_v44 = vpop.xlane.xlu1 %1135 }
 0x444   : > { %2209 = vrcp.f32 %v1136_v44 }
 0x447   : > { %v803_v32 = vpop.permute.xlu1 %802  ;;  %v1139_v45 = vpop.xlane.xlu0 %1138 }
 0x448   : > { %813 = vst.msk [vmem:[%s3041_s17 + $0x18] sm:$0xff] %vm805_vm2, %v803_v32  ;;  %v826_v46 = vpack.c.bf16 %v803_v32, %v803_v32  ;;  %2211 = vrcp.f32 %v1139_v45 }
 0x44a   : > { %v2208_v47 = vpop.eup %2207  ;;  %830 = vst.msk [vmem:[#allocation3 + $0xc] sm:$0xf] %vm818_vm3, %v826_v46 }
 0x44b   : > { %v1145_v48 = vmul.f32 %v2208_v47, %v2200_v31  ;;  %v800_v49 = vpop.permute.xlu0 %799 }
 0x44c   : > { %812 = vst.msk [vmem:[%s3041_s17 + $0x10] sm:$0xff] %vm805_vm2, %v800_v49  ;;  %v825_v50 = vpack.c.bf16 %v800_v49, %v800_v49 }
 0x44d   : > { %v1150_v51 = vpack.c.bf16 %v1145_v48, %v1145_v48 }
 0x44e   : > { %829 = vst.msk [vmem:[#allocation3 + $0x8] sm:$0xf] %vm818_vm3, %v825_v50  ;;  %v2210_v52 = vpop.eup %2209 }
 0x44f   : > { %2025 = vmatmul.mubr.msk.bf16.vlgmr.msra.gmra.mrb[16].mxu0 %vm805_vm2, %v1150_v51  ;;  %v1146_v57 = vmul.f32 %v2210_v52, %v2202_v35 }
 0x450   : > { %2036 = vmatprep.mubr.msk.bf16.mxu0 %vm2584_vm0, %v2583_v0 }
 0x451   : > { %v1156_v53 = vld [vmem:[#allocation3 + $0xc] sm:$0xf]  ;;  %v1151_v62 = vpack.c.bf16 %v1146_v57, %v1146_v57 }
 0x452   : > { %v2212_v54 = vpop.eup %2211  ;;  %v1300_v55 = vsel %vm1160_vm4, %v1156_v53, 0 }
 0x453   : > { %v1147_v56 = vmul.f32 %v2212_v54, %v2204_v37  ;;  %2035 = vmatpush3.bf16.msra.mxu0 %v1300_v55 }
 0x454   : > { %2046 = vmatprep.subr.bf16.mxu0 %v2583_v0 }
 0x455   : > { %v1155_v58 = vld [vmem:[#allocation3 + $0x8] sm:$0xf]  ;;  %v1152_v59 = vpack.c.bf16 %v1147_v56, %v1147_v56 }
 0x456   : > { %v1254_v61 = vsel %vm1160_vm4, %v1155_v58, 0 }
 0x457   : > { %2029 = vmatpush3.bf16.msra.mxu1 %v1254_v61  ;;  %2037 = vmatmul.mubr.msk.bf16.vlgmr.msra.gmra.mrb[20].mxu0 %vm805_vm2, %v1152_v59 }
 0x458   : > { %2040 = vmatprep.subr.bf16.mxu1 %v2583_v0  ;;  %2048 = vmatprep.mubr.msk.bf16.mxu0 %vm2584_vm0, %v2583_v0 }
 0x459   : > { %2047 = vmatpush3.bf16.msra.mxu0 %v1400_v2 }
 0x45a   : > { %2031 = vmatmul.mubr.msk.bf16.vlgmr.msra.gmra.mrb[16].mxu1 %vm805_vm2, %v1151_v62  ;;  %2058 = vmatprep.subr.bf16.mxu0 %v2583_v0 }
 0x45b   : > { %2041 = vmatpush3.bf16.msra.mxu1 %v1354_v63  ;;  %2042 = vmatprep.mubr.msk.bf16.mxu1 %vm2584_vm0, %v2583_v0 }
 0x45c   : > { %2052 = vmatprep.subr.bf16.mxu1 %v2583_v0 }
 0x4b9   : > { %v1198_v4 = vpop.f32.mrb[12].mxu1 }
 0x4ba   : > { %v1342_v5 = vpack.c.bf16 %v1198_v4, %v1198_v4  ;;  %v2020_v6 = vpop.f32.mrb[13].mxu1 }
 0x4bb   : > { %v1201_v8 = vpop.f32.mrb[14].mxu1 }
 0x4bc   : > { %v2021_v9 = vpop.f32.mrb[15].mxu1  ;;  %2043 = vmatmul.mubr.msk.bf16.vlgmr.msra.gmra.mrb[20].mxu1 %vm805_vm2, %v1342_v5 }
 0x4bd   : > { %2053 = vmatpush3.bf16.msra.mxu1 %v1446_v7  ;;  %2054 = vmatprep.mubr.msk.bf16.mxu1 %vm2584_vm0, %v2583_v0 }
 0x522   : > { %v1244_v11 = vpop.f32.mrb[16].mxu0 }
 0x523   : > { %v1343_v12 = vpack.c.bf16 %v1244_v11, %v1244_v11  ;;  %v2026_v13 = vpop.f32.mrb[17].mxu0 }
 0x524   : > { %v1247_v15 = vpop.f32.mrb[18].mxu0 }
 0x525   : > { %v2027_v16 = vpop.f32.mrb[19].mxu0  ;;  %2049 = vmatmul.mubr.msk.bf16.vlgmr.msra.gmra.mrb[24].mxu0 %vm805_vm2, %v1343_v12 }
 0x526   : > { %2059 = vmatpush3.bf16.msra.mxu0 %v1492_v14  ;;  %2060 = vmatprep.mubr.msk.bf16.mxu0 %vm2584_vm0, %v2583_v0 }
 0x52a   : > { %v1336_v17 = vpop.f32.mrb[20].mxu0 }
 0x52b   : > { %v1345_v18 = vpack.c.bf16 %v1336_v17, %v1336_v17  ;;  %v2038_v19 = vpop.f32.mrb[21].mxu0 }
 0x52c   : > { %v1339_v20 = vpop.f32.mrb[22].mxu0 }
 0x52d   : > { %v1290_v21 = vpop.f32.mrb[16].mxu1  ;;  %v2039_v22 = vpop.f32.mrb[23].mxu0  ;;  %2061 = vmatmul.mubr.msk.bf16.vlgmr.msra.gmra.mrb[28].mxu0 %vm805_vm2, %v1345_v18 }
 0x52e   : > { %v1344_v23 = vpack.c.bf16 %v1290_v21, %v1290_v21  ;;  %v2032_v24 = vpop.f32.mrb[17].mxu1 }
 0x52f   : > { %v1293_v25 = vpop.f32.mrb[18].mxu1 }
 0x530   : > { %v2033_v26 = vpop.f32.mrb[19].mxu1  ;;  %2055 = vmatmul.mubr.msk.bf16.vlgmr.msra.gmra.mrb[24].mxu1 %vm805_vm2, %v1344_v23 }
 0x531   : > { %2400 = shalt.err (!%p2397_p12)
}
 0x532   : > { %s2401_s19 = scalar_lea.hbm %s3126_s23, 128  ;;  %s2405_s25 = scalar_lea.hbm %s3388_s1, 256 }
 0x533   : > { %p2402_p8 = scmp.ne.s32.totalorder %s3126_s23, %s2401_s19  ;;  %p2406_p5 = scmp.lt.u32.totalorder %s3126_s23, %s3388_s1 }
 0x534   : > { %p2407_p9 = scmp.lt.u32.totalorder %s2405_s25, %s2401_s19  ;;  %p2409_p4 = scmp.lt.u32.totalorder %s2401_s19, %s3126_s23 }
 0x535   : > { %p2403_p11 = pnand %p2402_p8, %p3389_p7 }
 0x536   : > { %p2408_p2 = por %p2407_p9, %p2406_p5 }
 0x537   : > { %p2404_p10 = pneg %p2403_p11 }
 0x538   : > { %p2410_p3 = por %p2409_p4, %p2408_p2 }
 0x53a   : > { %p2411_p1 = pnand %p2410_p3, %p2404_p10 }
 0x53c   : > { %2414 = shalt.err (!%p2411_p1)
}
 0x53d   : > { %2083 = dma.vmem_to_hbm [thread:$0]  (%p3389_p7), %s1595_s11, 128, %s3126_s23, %s3133_s20  }
 0x53e   : > { %s1933_s26 = sshll.u32 %s3385_s13, 9  ;;  %s3390_s10 = sld [smem:[#allocation44_spill]] }
 0x53f   : > { %s2415_s23 = scalar_lea.vmem %s3155_s24, 512  ;;  %s2589_s28 = smov [#allocation18]  }
 0x540   : > { %p2416_p13 = scmp.ne.s32.totalorder %s3155_s24, %s2415_s23  ;;  %s2419_s11 = sshll.u32 %s2589_s28, 4  ;;  %s2420_s11 = int_to_ptr.vmem [resolvable:$false] %s2419_s11 }
 0x541   : > { %s2421_s17 = scalar_lea.vmem %s2420_s11, 1024  ;;  %p2422_p12 = scmp.lt.s32.totalorder %s3155_s24, %s2420_s11 }
 0x542   : > { %p2417_p6 = pnand %p2416_p13, %p3389_p7  ;;  %p2423_p8 = scmp.lt.s32.totalorder %s2421_s17, %s2415_s23 }
 0x544   : > { %s3167_s19 = scalar_lea.hbm %s3390_s10, %s1933_s26  ;;  %p2418_p0 = pneg %p2417_p6 }
 0x545   : > { %p2424_p11 = por %p2423_p8, %p2422_p12 }
 0x547   : > { %p2425_p10 = pnand %p2424_p11, %p2418_p0 }
 0x58f   : > { %v1390_v0 = vpop.f32.mrb[20].mxu1 }
 0x590   : > { %v2044_v27 = vpop.f32.mrb[21].mxu1 }
 0x591   : > { %v1393_v28 = vpop.f32.mrb[22].mxu1 }
 0x592   : > { %2428 = shalt.err (!%p2425_p10)
}
 0x593   : > { %s2429_s12 = scalar_lea.hbm %s3167_s19, 512  ;;  %s2433_s14 = scalar_lea.hbm %s3390_s10, 1024 }
 0x594   : > { %p2430_p5 = scmp.ne.s32.totalorder %s3167_s19, %s2429_s12  ;;  %p2434_p4 = scmp.lt.u32.totalorder %s3167_s19, %s3390_s10 }
 0x595   : > { %p2435_p3 = scmp.lt.u32.totalorder %s2433_s14, %s2429_s12  ;;  %p2437_p13 = scmp.lt.u32.totalorder %s2429_s12, %s3167_s19 }
 0x596   : > { %p2431_p9 = pnand %p2430_p5, %p3389_p7 }
 0x597   : > { %p2436_p1 = por %p2435_p3, %p2434_p4 }
 0x598   : > { %p2432_p2 = pneg %p2431_p9 }
 0x599   : > { %p2438_p6 = por %p2437_p13, %p2436_p1 }
 0x59b   : > { %p2439_p0 = pnand %p2438_p6, %p2432_p2 }
 0x59d   : > { %2442 = shalt.err (!%p2439_p0)
}
 0x59e   : > { %s2590_s22 = smov 128   ;;  %s2591_s23 = smov 8   ;;  %v2045_v29 = vpop.f32.mrb[23].mxu1 }
 0x59f   : > { %2084 = dma.vmem_to_hbm [thread:$0]  (%p3389_p7), %s3155_s24, 512, %s3167_s19, %s3133_s20, %s2590_s22, %s2590_s22, %s2591_s23  }
 0x5a0   : > { %s3391_s17 = sld [smem:[#allocation45_spill]]  ;;  %s1566_s25 = scalar_lea.sflag [#allocation20], %s2928_s3 }
 0x5a1   : > { %s2443_s14 = scalar_lea.vmem %s3160_s21, 512  ;;  %s2592_s29 = smov [#allocation19]  }
 0x5a2   : > { %p2444_p12 = scmp.ne.s32.totalorder %s3160_s21, %s2443_s14  ;;  %s2447_s27 = sshll.u32 %s2592_s29, 4  ;;  %s2448_s27 = int_to_ptr.vmem [resolvable:$false] %s2447_s27 }
 0x5a3   : > { %s2449_s18 = scalar_lea.vmem %s2448_s27, 1024  ;;  %p2450_p10 = scmp.lt.s32.totalorder %s3160_s21, %s2448_s27 }
 0x5a4   : > { %p2445_p8 = pnand %p2444_p12, %p3389_p7  ;;  %p2451_p5 = scmp.lt.s32.totalorder %s2449_s18, %s2443_s14 }
 0x5a6   : > { %s3392_s12 = smov %s3391_s17  ;;  %s3199_s4 = scalar_lea.hbm %s3391_s17, %s1933_s26 }
 0x5a7   : > { %p2446_p11 = pneg %p2445_p8  ;;  %p2452_p9 = por %p2451_p5, %p2450_p10 }
 0x5a9   : > { %p2453_p2 = pnand %p2452_p9, %p2446_p11 }
 0x5ab   : > { %2456 = shalt.err (!%p2453_p2)
}
 0x5ac   : > { %s2457_s24 = scalar_lea.hbm %s3199_s4, 512  ;;  %s2461_s19 = scalar_lea.hbm %s3392_s12, 1024 }
 0x5ad   : > { %p2458_p4 = scmp.ne.s32.totalorder %s3199_s4, %s2457_s24  ;;  %p2462_p13 = scmp.lt.u32.totalorder %s3199_s4, %s3392_s12 }
 0x5ae   : > { %p2463_p6 = scmp.lt.u32.totalorder %s2461_s19, %s2457_s24  ;;  %p2465_p12 = scmp.lt.u32.totalorder %s2457_s24, %s3199_s4 }
 0x5af   : > { %p2459_p3 = pnand %p2458_p4, %p3389_p7 }
 0x5b0   : > { %p2464_p0 = por %p2463_p6, %p2462_p13 }
 0x5b1   : > { %p2460_p1 = pneg %p2459_p3 }
 0x5b2   : > { %p2466_p8 = por %p2465_p12, %p2464_p0 }
 0x5b4   : > { %p2467_p11 = pnand %p2466_p8, %p2460_p1 }
 0x5b6   : > { %2470 = shalt.err (!%p2467_p11)
}
 0x5b7   : > { %2085 = dma.vmem_to_hbm [thread:$0]  (%p3389_p7), %s3160_s21, 512, %s3199_s4, %s1566_s25, %s2590_s22, %s2590_s22, %s2591_s23   ;;  %v1534_v31 = vsel %vm675_vm1, %v1390_v0, 0.0 }
 0x5b8   : > { %s3393_s22 = sld [smem:[#allocation41_spill]]  ;;  %s621_s23 = scalar_lea.vmem [#allocation15], %s2931_s9 }
 0x5b9   : > { %s1580_s17 = sshll.u32 %s621_s23, 4  ;;  %s3394_s4 = sshll.u32 %s3385_s13, 7  ;;  %s3243_s17 = int_to_ptr.vmem [resolvable:$true] %s1580_s17 }
 0x5ba   : > { %s3395_s29 = sld [smem:[#allocation42_spill]]  ;;  %s1551_s20 = scalar_lea.sflag [#allocation6], %s2928_s3 }
 0x5bb   : > { %s2471_s26 = scalar_lea.vmem %s3243_s17, 128  ;;  %s2593_s9 = smov [#allocation15]  }
 0x5bc   : > { %p2472_p10 = scmp.ne.s32.totalorder %s3243_s17, %s2471_s26  ;;  %s2475_s13 = sshll.u32 %s2593_s9, 4  ;;  %s2476_s13 = int_to_ptr.vmem [resolvable:$false] %s2475_s13 }
 0x5bd   : > { %s2477_s19 = scalar_lea.vmem %s2476_s13, 256  ;;  %p2478_p2 = scmp.lt.s32.totalorder %s3243_s17, %s2476_s13 }
 0x5be   : > { %v1920_v47 = vld [vmem:[%s3393_s22] ss:$0 sm:$0xff]  ;;  %p2473_p5 = pnand %p2472_p10, %p3389_p7  ;;  %p2479_p4 = scmp.lt.s32.totalorder %s2477_s19, %s2471_s26 }
 0x5c0   : > { %s3396_s27 = smov %s3395_s29  ;;  %s3241_s24 = scalar_lea.hbm %s3395_s29, %s3394_s4 }
 0x5c1   : > { %p2474_p9 = pneg %p2473_p5  ;;  %p2480_p3 = por %p2479_p4, %p2478_p2 }
 0x5c3   : > { %p2481_p1 = pnand %p2480_p3, %p2474_p9 }
 0x5f8   : > { %v1436_v30 = vpop.f32.mrb[24].mxu0 }
 0x5f9   : > { %v1535_v33 = vsel %vm675_vm1, %v1436_v30, 0.0  ;;  %v2050_v34 = vpop.f32.mrb[25].mxu0 }
 0x5fa   : > { %v1536_v35 = vadd.f32 %v1535_v33, %v1534_v31  ;;  %v1439_v36 = vpop.f32.mrb[26].mxu0 }
 0x5fb   : > { %v2051_v37 = vpop.f32.mrb[27].mxu0 }
 0x600   : > { %v1528_v38 = vpop.f32.mrb[28].mxu0 }
 0x601   : > { %v2062_v39 = vpop.f32.mrb[29].mxu0  ;;  %v1539_v46 = vsel %vm675_vm1, %v1528_v38, 0.0 }
 0x602   : > { %v1531_v40 = vpop.f32.mrb[30].mxu0 }
 0x603   : > { %v1482_v41 = vpop.f32.mrb[24].mxu1  ;;  %v2063_v42 = vpop.f32.mrb[31].mxu0 }
 0x604   : > { %v1537_v43 = vsel %vm675_vm1, %v1482_v41, 0.0  ;;  %v2056_v44 = vpop.f32.mrb[25].mxu1 }
 0x605   : > { %v1538_v32 = vadd.f32 %v1537_v43, %v1536_v35  ;;  %v1485_v45 = vpop.f32.mrb[26].mxu1 }
 0x606   : > { %v2057_v48 = vpop.f32.mrb[27].mxu1 }
 0x607   : > { %v1540_v49 = vadd.f32 %v1539_v46, %v1538_v32 }
 0x609   : > { %v1548_v50 = vadd.f32 %v1920_v47, %v1540_v49 }
 0x60b   : > { %1549 = vst.msk [vmem:[%s621_s23] sm:$0xff] %vm675_vm1, %v1548_v50 }
 0x60c   : > { %2484 = shalt.err (!%p2481_p1)
}
 0x60d   : > { %s2485_s3 = scalar_lea.hbm %s3241_s24, 128  ;;  %s2489_s18 = scalar_lea.hbm %s3396_s27, 256 }
 0x60e   : > { %p2486_p13 = scmp.ne.s32.totalorder %s3241_s24, %s2485_s3  ;;  %p2490_p12 = scmp.lt.u32.totalorder %s3241_s24, %s3396_s27 }
 0x60f   : > { %p2491_p8 = scmp.lt.u32.totalorder %s2489_s18, %s2485_s3  ;;  %p2493_p10 = scmp.lt.u32.totalorder %s2485_s3, %s3241_s24 }
 0x610   : > { %p2487_p6 = pnand %p2486_p13, %p3389_p7 }
 0x611   : > { %p2492_p11 = por %p2491_p8, %p2490_p12 }
 0x612   : > { %p2488_p0 = pneg %p2487_p6 }
 0x613   : > { %p2494_p5 = por %p2493_p10, %p2492_p11 }
 0x615   : > { %p2495_p9 = pnand %p2494_p5, %p2488_p0 }
 0x617   : > { %2498 = shalt.err (!%p2495_p9)
}
 0x618   : > { %2082 = dma.vmem_to_hbm [thread:$0]  (%p3389_p7), %s3243_s17, 128, %s3241_s24, %s1551_s20  }
 0x619 PF: > { %s3397_s23 = sld [smem:[#allocation28_spill]]  ;;  %s3398_s4 = sld [smem:[#allocation32_spill]] }
 0x61a   : > { %s3399_s25 = sld [smem:[#allocation31_spill]] }
 0x61f   : > { %s1638_s14 = sand.u32 1, %s3397_s23   ;;  %p3400_p2 = scmp.ne.s32.totalorder %s3398_s4, 0 }
 0x620   : > { %p3401_p4 = scmp.ge.s32.totalorder %s3399_s25, 2  ;;  %s1639_s29 = scalar_lea.sflag [#allocation6], %s1638_s14 }
 0x622   : > { %p2111_p3 = pnand %p3401_p4, %p3400_p2 }
 0x624   : > { %2540 = dma.done.wait (!%p2111_p3), %s1639_s29, 128  }
 0x625   : > { %2542 = vsyncadd (!%p2111_p3), %s1639_s29, 4294967168  ;;  %s3402_s26 = sadd.s32 4294967294, %s3399_s25  }
 0x626   : > { %s1647_s9 = sand.u32 1, %s3402_s26  }
 0x627   : > { %s1648_s13 = scalar_lea.sflag [#allocation17], %s1647_s9 }
 0x628   : > { %2544 = dma.done.wait (!%p2111_p3), %s1648_s13, 640  }
 0x629   : > { %2546 = vsyncadd (!%p2111_p3), %s1648_s13, 4294966656  ;;  %s1666_s16 = scalar_lea.sflag [#allocation20], %s1638_s14 }
 0x62a   : > { %2548 = dma.done.wait (!%p2111_p3), %s1666_s16, 512  }
 0x62b   : > { %2550 = vsyncadd (!%p2111_p3), %s1666_s16, 4294966784  ;;  %s42_s18 = sadd.s32 1, %s3399_s25   ;;  %s3403_s17 = sld [smem:[#allocation35_spill]] }
 0x62c   : > { %p39_p7 = scmp.ge.s32.totalorder %s42_s18, 4   ;;  %s3404_s16 = sld [smem:[#allocation30_spill]] }
 0x62d   : > { %s3405_s24 = sld [smem:[#allocation33_spill]]  ;;  %s3406_s29 = smov %s2557_s30 }
 0x62e   : > { %s3407_s30 = smov %s2561_s15  ;;  %41 = sbr.rel (!%p39_p7) target bundleno = 25 (0x19), region = 198 }
 0x631   : > { %s3408_s15 = smov %s3403_s17 }
 0x633   : > { %s3409_s17 = smov %s3405_s24 }
 0x635   :  { %1671 = vsyncpa [#allocation5], 1 }
 0x636   :  { %1673 = vsyncpa [#allocation5 + $0x1], 1 }
 0x637   :  { %1674 = vsyncpa [#allocation8], 1 }
 0x638   :  { %1676 = vsyncpa [#allocation8 + $0x1], 1 }
 0x639   :  { %1677 = vsyncpa [#allocation11], 1 }
 0x63a   :  { %1678 = vsyncpa [#allocation14], 1 }
 0x63b   :  { %1679 = vsyncpa [#allocation6], 1 }
 0x63c   :  { %1681 = vsyncpa [#allocation6 + $0x1], 1 }
 0x63d   :  { %1682 = vsyncpa [#allocation17], 1 }
 0x63e   :  { %1684 = vsyncpa [#allocation17 + $0x1], 1 }
 0x63f   :  { %1685 = vsyncpa [#allocation20], 1 }
 0x640   :  { %1687 = vsyncpa [#allocation20 + $0x1], 1 }

</bundles_post_ra>
